<compile_context>
chip_gen: v5e
topology: v5e:2x2
jax: 0.10.0
libtpu: 0.0.40
codegen_flags: <defaults>
</compile_context>

<pallas_src>
import functools

import jax
import jax.numpy as jnp
from jax.experimental import pallas as pl
from jax.experimental.pallas import tpu as pltpu

BN_EPS = 1e-5


def se_kernel(x_ref, w1_ref, b1_ref, w2_ref, o_ref, *, inv_hw):
    """x_ref / o_ref: (B_tile, C, HW), NCHW-native (HW on the lane axis).

    w1_ref: (mid, C) BN-folded 1x1-conv weight; b1_ref: (mid, 1) folded bias;
    w2_ref: (C, mid) second 1x1-conv weight (no bias).
    """
    b_tile = x_ref.shape[0]
    w1 = w1_ref[...]
    b1 = b1_ref[...]
    w2 = w2_ref[...]

    # Static unroll over samples in this block; iterations are independent so the
    # scheduler can overlap sample b+1's pool/matmuls with sample b's stores while
    # the next block's DMA streams in.
    for b in range(b_tile):
        # ---- squeeze: global average pool over spatial (lane) axis, f32 accumulate.
        pooled = jnp.sum(x_ref[b], axis=-1, keepdims=True,
                         dtype=jnp.float32) * inv_hw                     # (C, 1)

        # ---- excitation: BN-folded 1x1 conv + ReLU, then 1x1 conv (MXU, f32 acc).
        y1 = jnp.dot(w1, pooled, preferred_element_type=jnp.float32) + b1  # (mid, 1)
        y1 = jnp.maximum(y1, 0.0)
        y2 = jnp.dot(w2, y1, preferred_element_type=jnp.float32)           # (C, 1)

        # ---- HardSigmoid: relu6(x + 3) / 6
        s = jnp.clip(y2 + 3.0, 0.0, 6.0) * (1.0 / 6.0)                     # (C, 1) f32

        # ---- scale: (C, 1) broadcasts over the HW lane axis; multiply in f32,
        #      cast once on the lane-dense store; x re-read from the ref.
        o_ref[b] = (x_ref[b].astype(jnp.float32) * s).astype(o_ref.dtype)


def _pick_batch_tile(n, bytes_per_sample, target_bytes=2 << 20,
                     cap_bytes=4 << 20, max_unroll=32):
    """Largest batch tile (divisor of n) giving ~1-4 MiB blocks, >=2 grid steps."""
    divisors = [d for d in range(1, n + 1) if n % d == 0]
    cands = [d for d in divisors if d <= max_unroll and (n == 1 or n // d >= 2)]
    if not cands:
        cands = [1]
    under_cap = [d for d in cands if d * bytes_per_sample <= cap_bytes]
    if not under_cap:
        return min(cands)
    reached = [d for d in under_cap if d * bytes_per_sample >= target_bytes]
    return min(reached) if reached else max(under_cap)


def se_layer(x, w1, gamma, beta, rmean, rvar, w2):
    """x: (N, C, H, W) NCHW. w1: (mid, C). gamma/beta/rmean/rvar: (mid,). w2: (C, mid)."""
    N, C, H, W = x.shape
    HW = H * W
    mid = w1.shape[0]

    # Free relayout: NCHW -> (N, C, H*W); no transpose, no extra HBM traffic.
    x3 = x.reshape(N, C, HW)

    # Fold eval-mode BatchNorm into the first 1x1 conv (host side, tiny).
    bn_scale = gamma * jax.lax.rsqrt(rvar + BN_EPS)                 # (mid,)
    w1f = (w1 * bn_scale[:, None]).astype(jnp.float32)              # (mid, C)
    b1 = (beta - rmean * bn_scale).reshape(mid, 1).astype(jnp.float32)
    w2f = w2.astype(jnp.float32)                                    # (C, mid)

    bytes_per_sample = C * HW * x.dtype.itemsize
    b_tile = _pick_batch_tile(N, bytes_per_sample)
    grid = (N // b_tile,)
    block_bytes = b_tile * bytes_per_sample
    # Double-buffered input + output blocks plus params/slack; >= v5e's 16 MiB
    # default scoped limit, well under v7x's 64 MiB physical VMEM.
    vmem_limit = int(min(48 * (1 << 20),
                         max(16 * (1 << 20), 4 * block_bytes + 2 * (1 << 20))))

    kernel = functools.partial(se_kernel, inv_hw=1.0 / HW)

    def param_spec(shape):
        return pl.BlockSpec(shape, lambda n: (0, 0))

    out = pl.pallas_call(
        kernel,
        out_shape=jax.ShapeDtypeStruct((N, C, HW), x.dtype),
        grid=grid,
        in_specs=[
            pl.BlockSpec((b_tile, C, HW), lambda n: (n, 0, 0)),  # x: B_tile samples/step
            param_spec((mid, C)),                                 # BN-folded conv1 weight
            param_spec((mid, 1)),                                 # folded conv1 bias
            param_spec((C, mid)),                                 # conv2 weight
        ],
        out_specs=pl.BlockSpec((b_tile, C, HW), lambda n: (n, 0, 0)),
        compiler_params=pltpu.CompilerParams(
            dimension_semantics=("parallel",),
            vmem_limit_bytes=vmem_limit,
        ),
    )(x3, w1f, b1, w2f)

    return out.reshape(N, C, H, W)


def se_layer_ref(x, w1, gamma, beta, rmean, rvar, w2):
    # pure-JAX reference (unfolded BN) for correctness checking
    pooled = jnp.mean(x, axis=(2, 3))                               # (N, C)
    y1 = pooled @ w1.T
    y1 = (y1 - rmean) * jax.lax.rsqrt(rvar + BN_EPS) * gamma + beta
    y1 = jnp.maximum(y1, 0.0)
    y2 = y1 @ w2.T
    s = jnp.clip(y2 + 3.0, 0.0, 6.0) / 6.0
    return x * s[:, :, None, None]


if __name__ == "__main__":
    key = jax.random.PRNGKey(0)
    N, C, H, W = 8, 64, 16, 16
    reduction = 4
    mid = C // reduction

    k_x, k_w1, k_w2, k_m = jax.random.split(key, 4)
    x = jax.random.normal(k_x, (N, C, H, W), dtype=jnp.float32)

    # Conv2d(C -> mid, k=1, norm='bn', act='relu'): weight (mid, C); BN eval stats.
    w1 = jax.random.normal(k_w1, (mid, C), dtype=jnp.float32) * 0.1
    gamma = jnp.linspace(0.8, 1.2, mid, dtype=jnp.float32)
    beta = jnp.linspace(-0.1, 0.1, mid, dtype=jnp.float32)
    rmean = jax.random.normal(k_m, (mid,), dtype=jnp.float32) * 0.05
    rvar = jnp.linspace(0.5, 1.5, mid, dtype=jnp.float32)
    # Conv2d(mid -> C, k=1, bias=False): weight (C, mid)
    w2 = jax.random.normal(k_w2, (C, mid), dtype=jnp.float32) * 0.1

    out = se_layer(x, w1, gamma, beta, rmean, rvar, w2)
    out = jax.block_until_ready(out)

    ref = se_layer_ref(x, w1, gamma, beta, rmean, rvar, w2)
    assert out.shape == (N, C, H, W)
    assert jnp.allclose(out, ref, atol=1e-5, rtol=1e-5), "mismatch vs reference"

    print("KERNEL_OK")
</pallas_src>

<mosaic_0001>
module attributes {stable_mosaic.version = 11 : i64} {
  func.func @se_kernel(%arg0: i32, %arg1: memref<4x64x256xf32, #tpu.memory_space<vmem>>, %arg2: memref<16x64xf32, #tpu.memory_space<vmem>>, %arg3: memref<16x1xf32, #tpu.memory_space<vmem>>, %arg4: memref<64x16xf32, #tpu.memory_space<vmem>>, %arg5: memref<4x64x256xf32, #tpu.memory_space<vmem>>) attributes {dimension_semantics = [#tpu.dimension_semantics<parallel>], iteration_bounds = array<i64: 2>, scalar_prefetch = 0 : i64, scratch_operands = 0 : i64, tpu.core_type = #tpu.core_type<tc>, window_params = [{transform_indices = @transform_0, window_bounds = array<i64: 4, 64, 256>}, {pipeline_mode = #tpu.pipeline_mode<synchronous>, transform_indices = @transform_1, window_bounds = array<i64: 16, 64>}, {pipeline_mode = #tpu.pipeline_mode<synchronous>, transform_indices = @transform_2, window_bounds = array<i64: 16, 1>}, {pipeline_mode = #tpu.pipeline_mode<synchronous>, transform_indices = @transform_3, window_bounds = array<i64: 64, 16>}, {transform_indices = @transform_4, window_bounds = array<i64: 4, 64, 256>}]} {
    %c0 = arith.constant 0 : index
    %c0_0 = arith.constant 0 : index
    %0 = vector.load %arg2[%c0, %c0_0] : memref<16x64xf32, #tpu.memory_space<vmem>>, vector<16x64xf32>
    %c0_1 = arith.constant 0 : index
    %c0_2 = arith.constant 0 : index
    %1 = vector.load %arg3[%c0_1, %c0_2] : memref<16x1xf32, #tpu.memory_space<vmem>>, vector<16x1xf32>
    %c0_3 = arith.constant 0 : index
    %c0_4 = arith.constant 0 : index
    %2 = vector.load %arg4[%c0_3, %c0_4] : memref<64x16xf32, #tpu.memory_space<vmem>>, vector<64x16xf32>
    %c0_5 = arith.constant 0 : index
    %c0_6 = arith.constant 0 : index
    %c0_7 = arith.constant 0 : index
    %3 = vector.load %arg1[%c0_5, %c0_6, %c0_7] : memref<4x64x256xf32, #tpu.memory_space<vmem>>, vector<1x64x256xf32>
    %4 = vector.shape_cast %3 : vector<1x64x256xf32> to vector<64x256xf32>
    %cst = arith.constant dense<0.000000e+00> : vector<64xf32>
    %5 = vector.multi_reduction <add>, %4, %cst [1] : vector<64x256xf32> to vector<64xf32>
    %6 = vector.shape_cast %5 : vector<64xf32> to vector<64x1xf32>
    %cst_8 = arith.constant 3.906250e-03 : f32
    %7 = vector.broadcast %cst_8 : f32 to vector<64x1xf32>
    %8 = arith.mulf %6, %7 : vector<64x1xf32>
    %cst_9 = arith.constant dense<0.000000e+00> : vector<16x1xf32>
    %9 = tpu.matmul %0, %8, %cst_9 {dimension_numbers = #tpu.dot_dimension_numbers<[1], [0], [0], [1], [0, 0, 1, 1], [], []>} : vector<16x64xf32>, vector<64x1xf32>, vector<16x1xf32> -> vector<16x1xf32>
    %10 = arith.addf %9, %1 : vector<16x1xf32>
    %cst_10 = arith.constant 0.000000e+00 : f32
    %11 = vector.broadcast %cst_10 : f32 to vector<16x1xf32>
    %12 = arith.maximumf %10, %11 : vector<16x1xf32>
    %cst_11 = arith.constant dense<0.000000e+00> : vector<64x1xf32>
    %13 = tpu.matmul %2, %12, %cst_11 {dimension_numbers = #tpu.dot_dimension_numbers<[1], [0], [0], [1], [0, 0, 1, 1], [], []>} : vector<64x16xf32>, vector<16x1xf32>, vector<64x1xf32> -> vector<64x1xf32>
    %cst_12 = arith.constant 3.000000e+00 : f32
    %14 = vector.broadcast %cst_12 : f32 to vector<64x1xf32>
    %15 = arith.addf %13, %14 : vector<64x1xf32>
    %cst_13 = arith.constant 0.000000e+00 : f32
    %cst_14 = arith.constant 6.000000e+00 : f32
    %16 = vector.broadcast %cst_13 : f32 to vector<64x1xf32>
    %17 = arith.maximumf %16, %15 : vector<64x1xf32>
    %18 = vector.broadcast %cst_14 : f32 to vector<64x1xf32>
    %19 = arith.minimumf %18, %17 : vector<64x1xf32>
    %cst_15 = arith.constant 0.166666672 : f32
    %20 = vector.broadcast %cst_15 : f32 to vector<64x1xf32>
    %21 = arith.mulf %19, %20 : vector<64x1xf32>
    %c0_16 = arith.constant 0 : index
    %c0_17 = arith.constant 0 : index
    %c0_18 = arith.constant 0 : index
    %22 = vector.load %arg1[%c0_16, %c0_17, %c0_18] : memref<4x64x256xf32, #tpu.memory_space<vmem>>, vector<1x64x256xf32>
    %23 = vector.shape_cast %22 : vector<1x64x256xf32> to vector<64x256xf32>
    %24 = vector.broadcast %21 : vector<64x1xf32> to vector<64x256xf32>
    %25 = arith.mulf %23, %24 : vector<64x256xf32>
    %c0_19 = arith.constant 0 : index
    %c0_20 = arith.constant 0 : index
    %c0_21 = arith.constant 0 : index
    %26 = vector.load %arg5[%c0_19, %c0_20, %c0_21] : memref<4x64x256xf32, #tpu.memory_space<vmem>>, vector<1x64x256xf32>
    %27 = vector.shape_cast %26 : vector<1x64x256xf32> to vector<64x256xf32>
    %28 = vector.shape_cast %25 : vector<64x256xf32> to vector<1x64x256xf32>
    tpu.vector_store %arg5[%c0_19, %c0_20, %c0_21], %28 {strides = array<i32>} : memref<4x64x256xf32, #tpu.memory_space<vmem>>, vector<1x64x256xf32>,
    %c1 = arith.constant 1 : index
    %c0_22 = arith.constant 0 : index
    %c0_23 = arith.constant 0 : index
    %29 = vector.load %arg1[%c1, %c0_22, %c0_23] : memref<4x64x256xf32, #tpu.memory_space<vmem>>, vector<1x64x256xf32>
    %30 = vector.shape_cast %29 : vector<1x64x256xf32> to vector<64x256xf32>
    %cst_24 = arith.constant dense<0.000000e+00> : vector<64xf32>
    %31 = vector.multi_reduction <add>, %30, %cst_24 [1] : vector<64x256xf32> to vector<64xf32>
    %32 = vector.shape_cast %31 : vector<64xf32> to vector<64x1xf32>
    %cst_25 = arith.constant 3.906250e-03 : f32
    %33 = vector.broadcast %cst_25 : f32 to vector<64x1xf32>
    %34 = arith.mulf %32, %33 : vector<64x1xf32>
    %cst_26 = arith.constant dense<0.000000e+00> : vector<16x1xf32>
    %35 = tpu.matmul %0, %34, %cst_26 {dimension_numbers = #tpu.dot_dimension_numbers<[1], [0], [0], [1], [0, 0, 1, 1], [], []>} : vector<16x64xf32>, vector<64x1xf32>, vector<16x1xf32> -> vector<16x1xf32>
    %36 = arith.addf %35, %1 : vector<16x1xf32>
    %cst_27 = arith.constant 0.000000e+00 : f32
    %37 = vector.broadcast %cst_27 : f32 to vector<16x1xf32>
    %38 = arith.maximumf %36, %37 : vector<16x1xf32>
    %cst_28 = arith.constant dense<0.000000e+00> : vector<64x1xf32>
    %39 = tpu.matmul %2, %38, %cst_28 {dimension_numbers = #tpu.dot_dimension_numbers<[1], [0], [0], [1], [0, 0, 1, 1], [], []>} : vector<64x16xf32>, vector<16x1xf32>, vector<64x1xf32> -> vector<64x1xf32>
    %cst_29 = arith.constant 3.000000e+00 : f32
    %40 = vector.broadcast %cst_29 : f32 to vector<64x1xf32>
    %41 = arith.addf %39, %40 : vector<64x1xf32>
    %cst_30 = arith.constant 0.000000e+00 : f32
    %cst_31 = arith.constant 6.000000e+00 : f32
    %42 = vector.broadcast %cst_30 : f32 to vector<64x1xf32>
    %43 = arith.maximumf %42, %41 : vector<64x1xf32>
    %44 = vector.broadcast %cst_31 : f32 to vector<64x1xf32>
    %45 = arith.minimumf %44, %43 : vector<64x1xf32>
    %cst_32 = arith.constant 0.166666672 : f32
    %46 = vector.broadcast %cst_32 : f32 to vector<64x1xf32>
    %47 = arith.mulf %45, %46 : vector<64x1xf32>
    %c1_33 = arith.constant 1 : index
    %c0_34 = arith.constant 0 : index
    %c0_35 = arith.constant 0 : index
    %48 = vector.load %arg1[%c1_33, %c0_34, %c0_35] : memref<4x64x256xf32, #tpu.memory_space<vmem>>, vector<1x64x256xf32>
    %49 = vector.shape_cast %48 : vector<1x64x256xf32> to vector<64x256xf32>
    %50 = vector.broadcast %47 : vector<64x1xf32> to vector<64x256xf32>
    %51 = arith.mulf %49, %50 : vector<64x256xf32>
    %c1_36 = arith.constant 1 : index
    %c0_37 = arith.constant 0 : index
    %c0_38 = arith.constant 0 : index
    %52 = vector.load %arg5[%c1_36, %c0_37, %c0_38] : memref<4x64x256xf32, #tpu.memory_space<vmem>>, vector<1x64x256xf32>
    %53 = vector.shape_cast %52 : vector<1x64x256xf32> to vector<64x256xf32>
    %54 = vector.shape_cast %51 : vector<64x256xf32> to vector<1x64x256xf32>
    tpu.vector_store %arg5[%c1_36, %c0_37, %c0_38], %54 {strides = array<i32>} : memref<4x64x256xf32, #tpu.memory_space<vmem>>, vector<1x64x256xf32>,
    %c2 = arith.constant 2 : index
    %c0_39 = arith.constant 0 : index
    %c0_40 = arith.constant 0 : index
    %55 = vector.load %arg1[%c2, %c0_39, %c0_40] : memref<4x64x256xf32, #tpu.memory_space<vmem>>, vector<1x64x256xf32>
    %56 = vector.shape_cast %55 : vector<1x64x256xf32> to vector<64x256xf32>
    %cst_41 = arith.constant dense<0.000000e+00> : vector<64xf32>
    %57 = vector.multi_reduction <add>, %56, %cst_41 [1] : vector<64x256xf32> to vector<64xf32>
    %58 = vector.shape_cast %57 : vector<64xf32> to vector<64x1xf32>
    %cst_42 = arith.constant 3.906250e-03 : f32
    %59 = vector.broadcast %cst_42 : f32 to vector<64x1xf32>
    %60 = arith.mulf %58, %59 : vector<64x1xf32>
    %cst_43 = arith.constant dense<0.000000e+00> : vector<16x1xf32>
    %61 = tpu.matmul %0, %60, %cst_43 {dimension_numbers = #tpu.dot_dimension_numbers<[1], [0], [0], [1], [0, 0, 1, 1], [], []>} : vector<16x64xf32>, vector<64x1xf32>, vector<16x1xf32> -> vector<16x1xf32>
    %62 = arith.addf %61, %1 : vector<16x1xf32>
    %cst_44 = arith.constant 0.000000e+00 : f32
    %63 = vector.broadcast %cst_44 : f32 to vector<16x1xf32>
    %64 = arith.maximumf %62, %63 : vector<16x1xf32>
    %cst_45 = arith.constant dense<0.000000e+00> : vector<64x1xf32>
    %65 = tpu.matmul %2, %64, %cst_45 {dimension_numbers = #tpu.dot_dimension_numbers<[1], [0], [0], [1], [0, 0, 1, 1], [], []>} : vector<64x16xf32>, vector<16x1xf32>, vector<64x1xf32> -> vector<64x1xf32>
    %cst_46 = arith.constant 3.000000e+00 : f32
    %66 = vector.broadcast %cst_46 : f32 to vector<64x1xf32>
    %67 = arith.addf %65, %66 : vector<64x1xf32>
    %cst_47 = arith.constant 0.000000e+00 : f32
    %cst_48 = arith.constant 6.000000e+00 : f32
    %68 = vector.broadcast %cst_47 : f32 to vector<64x1xf32>
    %69 = arith.maximumf %68, %67 : vector<64x1xf32>
    %70 = vector.broadcast %cst_48 : f32 to vector<64x1xf32>
    %71 = arith.minimumf %70, %69 : vector<64x1xf32>
    %cst_49 = arith.constant 0.166666672 : f32
    %72 = vector.broadcast %cst_49 : f32 to vector<64x1xf32>
    %73 = arith.mulf %71, %72 : vector<64x1xf32>
    %c2_50 = arith.constant 2 : index
    %c0_51 = arith.constant 0 : index
    %c0_52 = arith.constant 0 : index
    %74 = vector.load %arg1[%c2_50, %c0_51, %c0_52] : memref<4x64x256xf32, #tpu.memory_space<vmem>>, vector<1x64x256xf32>
    %75 = vector.shape_cast %74 : vector<1x64x256xf32> to vector<64x256xf32>
    %76 = vector.broadcast %73 : vector<64x1xf32> to vector<64x256xf32>
    %77 = arith.mulf %75, %76 : vector<64x256xf32>
    %c2_53 = arith.constant 2 : index
    %c0_54 = arith.constant 0 : index
    %c0_55 = arith.constant 0 : index
    %78 = vector.load %arg5[%c2_53, %c0_54, %c0_55] : memref<4x64x256xf32, #tpu.memory_space<vmem>>, vector<1x64x256xf32>
    %79 = vector.shape_cast %78 : vector<1x64x256xf32> to vector<64x256xf32>
    %80 = vector.shape_cast %77 : vector<64x256xf32> to vector<1x64x256xf32>
    tpu.vector_store %arg5[%c2_53, %c0_54, %c0_55], %80 {strides = array<i32>} : memref<4x64x256xf32, #tpu.memory_space<vmem>>, vector<1x64x256xf32>,
    %c3 = arith.constant 3 : index
    %c0_56 = arith.constant 0 : index
    %c0_57 = arith.constant 0 : index
    %81 = vector.load %arg1[%c3, %c0_56, %c0_57] : memref<4x64x256xf32, #tpu.memory_space<vmem>>, vector<1x64x256xf32>
    %82 = vector.shape_cast %81 : vector<1x64x256xf32> to vector<64x256xf32>
    %cst_58 = arith.constant dense<0.000000e+00> : vector<64xf32>
    %83 = vector.multi_reduction <add>, %82, %cst_58 [1] : vector<64x256xf32> to vector<64xf32>
    %84 = vector.shape_cast %83 : vector<64xf32> to vector<64x1xf32>
    %cst_59 = arith.constant 3.906250e-03 : f32
    %85 = vector.broadcast %cst_59 : f32 to vector<64x1xf32>
    %86 = arith.mulf %84, %85 : vector<64x1xf32>
    %cst_60 = arith.constant dense<0.000000e+00> : vector<16x1xf32>
    %87 = tpu.matmul %0, %86, %cst_60 {dimension_numbers = #tpu.dot_dimension_numbers<[1], [0], [0], [1], [0, 0, 1, 1], [], []>} : vector<16x64xf32>, vector<64x1xf32>, vector<16x1xf32> -> vector<16x1xf32>
    %88 = arith.addf %87, %1 : vector<16x1xf32>
    %cst_61 = arith.constant 0.000000e+00 : f32
    %89 = vector.broadcast %cst_61 : f32 to vector<16x1xf32>
    %90 = arith.maximumf %88, %89 : vector<16x1xf32>
    %cst_62 = arith.constant dense<0.000000e+00> : vector<64x1xf32>
    %91 = tpu.matmul %2, %90, %cst_62 {dimension_numbers = #tpu.dot_dimension_numbers<[1], [0], [0], [1], [0, 0, 1, 1], [], []>} : vector<64x16xf32>, vector<16x1xf32>, vector<64x1xf32> -> vector<64x1xf32>
    %cst_63 = arith.constant 3.000000e+00 : f32
    %92 = vector.broadcast %cst_63 : f32 to vector<64x1xf32>
    %93 = arith.addf %91, %92 : vector<64x1xf32>
    %cst_64 = arith.constant 0.000000e+00 : f32
    %cst_65 = arith.constant 6.000000e+00 : f32
    %94 = vector.broadcast %cst_64 : f32 to vector<64x1xf32>
    %95 = arith.maximumf %94, %93 : vector<64x1xf32>
    %96 = vector.broadcast %cst_65 : f32 to vector<64x1xf32>
    %97 = arith.minimumf %96, %95 : vector<64x1xf32>
    %cst_66 = arith.constant 0.166666672 : f32
    %98 = vector.broadcast %cst_66 : f32 to vector<64x1xf32>
    %99 = arith.mulf %97, %98 : vector<64x1xf32>
    %c3_67 = arith.constant 3 : index
    %c0_68 = arith.constant 0 : index
    %c0_69 = arith.constant 0 : index
    %100 = vector.load %arg1[%c3_67, %c0_68, %c0_69] : memref<4x64x256xf32, #tpu.memory_space<vmem>>, vector<1x64x256xf32>
    %101 = vector.shape_cast %100 : vector<1x64x256xf32> to vector<64x256xf32>
    %102 = vector.broadcast %99 : vector<64x1xf32> to vector<64x256xf32>
    %103 = arith.mulf %101, %102 : vector<64x256xf32>
    %c3_70 = arith.constant 3 : index
    %c0_71 = arith.constant 0 : index
    %c0_72 = arith.constant 0 : index
    %104 = vector.load %arg5[%c3_70, %c0_71, %c0_72] : memref<4x64x256xf32, #tpu.memory_space<vmem>>, vector<1x64x256xf32>
    %105 = vector.shape_cast %104 : vector<1x64x256xf32> to vector<64x256xf32>
    %106 = vector.shape_cast %103 : vector<64x256xf32> to vector<1x64x256xf32>
    tpu.vector_store %arg5[%c3_70, %c0_71, %c0_72], %106 {strides = array<i32>} : memref<4x64x256xf32, #tpu.memory_space<vmem>>, vector<1x64x256xf32>,
    return
  }
  func.func @transform_0(%arg0: i32) -> (i32, i32, i32) {
    %c0_i32 = arith.constant 0 : i32
    %c0_i32_0 = arith.constant 0 : i32
    %c0_i32_1 = arith.constant 0 : i32
    return %arg0, %c0_i32, %c0_i32_0 : i32, i32, i32
  }
  func.func @transform_1(%arg0: i32) -> (i32, i32) {
    %c0_i32 = arith.constant 0 : i32
    %c0_i32_0 = arith.constant 0 : i32
    %c0_i32_1 = arith.constant 0 : i32
    return %c0_i32, %c0_i32_0 : i32, i32
  }
  func.func @transform_2(%arg0: i32) -> (i32, i32) {
    %c0_i32 = arith.constant 0 : i32
    %c0_i32_0 = arith.constant 0 : i32
    %c0_i32_1 = arith.constant 0 : i32
    return %c0_i32, %c0_i32_0 : i32, i32
  }
  func.func @transform_3(%arg0: i32) -> (i32, i32) {
    %c0_i32 = arith.constant 0 : i32
    %c0_i32_0 = arith.constant 0 : i32
    %c0_i32_1 = arith.constant 0 : i32
    return %c0_i32, %c0_i32_0 : i32, i32
  }
  func.func @transform_4(%arg0: i32) -> (i32, i32, i32) {
    %c0_i32 = arith.constant 0 : i32
    %c0_i32_0 = arith.constant 0 : i32
    %c0_i32_1 = arith.constant 0 : i32
    return %arg0, %c0_i32, %c0_i32_0 : i32, i32, i32
  }
}

</mosaic_0001>

<bundles_post_ra>
// kernel: tpu_custom_call.1
= control target key start
LH: loop header
LB: loop body
LE: loop exit
PB: predicated region body
PF: predicated region fallthrough
CT: control target
= control target key end

     0   :  { %9 = vsyncpa [#allocation3], 0  ;;  %s2183_s0 = inlined_call_operand.hbm [shape: f32[8,64,256], index: 0, kind: input, shape index: {}]   ;;  %s2184_s1 = inlined_call_operand.vmem [shape: f32[16,64], index: 1, kind: input, shape index: {}]   ;;  %s2185_s2 = inlined_call_operand.vmem [shape: f32[16,1], index: 2, kind: input, shape index: {}]   ;;  %s2186_s3 = inlined_call_operand.vmem [shape: f32[64,16], index: 3, kind: input, shape index: {}]   ;;  %s2187_s4 = inlined_call_operand.hbm [shape: f32[8,64,256], index: 4, kind: output, shape index: {}]  }
   0x1   :  { %11 = vsyncpa [#allocation3 + $0x1], 0 }
   0x2   :  { %12 = vsyncpa [#allocation4], 0 }
   0x3   :  { %14 = vsyncpa [#allocation4 + $0x1], 0  ;;  %s1569_s15 = smov 0   ;;  %s1571_s16 = smov 0  }
   0x4   :  { %s1573_s17 = smov 0   ;;  %s1575_s18 = smov 0  }
   0x5 LB: > { %s1590_s19 = sadd.s32 4294967295, %s1537_s18   ;;  %s1201_s20 = sadd.s32 4294967294, %s1537_s18   ;;  %s1537_s18 = sphi %s1575_s18, %s2242_s18   ;;  %s1533_s17 = sphi %s1573_s17, %s2241_s17   ;;  %s1529_s16 = sphi %s1571_s16, %s2240_s16   ;;  %s1525_s15 = sphi %s1569_s15, %s2239_s15  }
   0x6   : > { %s1594_s21 = sadd.s32 1, %s1537_s18   ;;  %s27_s22 = sadd.s32 1, %s1533_s17 }
   0x7   : > { %s24_s23 = ssub.s32 %s1537_s18, %s1594_s21  ;;  %p34_p0 = scmp.ne.s32.totalorder %s1533_s17, %s1529_s16 }
   0x8   : > { %p25_p1 = scmp.eq.s32.totalorder %s24_s23, 0  ;;  %p35_p2 = scmp.eq.s32.totalorder %s1537_s18, 0 }
   0x9   : > { %p40_p3 = scmp.ne.s32.totalorder %s1529_s16, %s1525_s15  ;;  %p41_p4 = scmp.eq.s32.totalorder %s1590_s19, 0 }
   0xa   : > { %s1606_s24 = scalar_select %p25_p1, %s1533_s17, %s27_s22  }
   0xb   : > { %p1608_p5 = por %p35_p2, %p34_p0  ;;  %p1612_p6 = por %p41_p4, %p40_p3 }
   0xc   : > { %p127_p7 = scmp.eq.s32.totalorder %s1590_s19, 1  ;;  %p133_p8 = scmp.eq.s32.totalorder %s1201_s20, 1 }
   0xd   : > { %p1381_p10 = scmp.lt.s32.totalorder %s1537_s18, 2  ;;  %s162_s29 = sand.u32 1, %s1533_s17  }
   0xe   : > { %p1619_p11 = por %p127_p7, %p34_p0  ;;  %p1623_p12 = por %p133_p8, %p40_p3 }
   0xf   : > { %s1354_s30 = sshll.u32 %s1537_s18, 9  ;;  %s1204_s5 = sshll.u32 %s162_s29, 9 }
  0x10   : > { %s172_s8 = scalar_lea.hbm %s2183_s0, %s1354_s30  ;;  %s166_s10 = scalar_lea.vmem [#allocation2], %s1204_s5 }
  0x11   : > { %s173_s9 = sshll.u32 %s172_s8, 4  ;;  %s175_s11 = sshll.u32 %s166_s10, 4  ;;  %s174_s9 = int_to_ptr.hbm [resolvable:$true] %s173_s9  ;;  %s176_s11 = int_to_ptr.vmem [resolvable:$true] %s175_s11 }
  0x12   : > { %p1634_p13 = pnand %p1381_p10, %p1608_p5  ;;  %p1208_p0 = scmp.ge.s32.totalorder %s1537_s18, 1 }
  0x13   : > { %p183_p1 = scmp.lt.s32.totalorder %s1537_s18, 3  ;;  %s163_s13 = scalar_lea.sflag [#allocation3], %s162_s29 }
  0x14   : > { %s1441_s14 = sshra.s32 %s174_s9, 4  ;;  %p1445_p3 = pneg %p1634_p13  ;;  %s1442_s14 = int_to_ptr.hbm [resolvable:$true] %s1441_s14 }
  0x15   : > { %s1443_s20 = scalar_lea.hbm %s1442_s14, 512  ;;  %s1448_s25 = scalar_lea.hbm %s2183_s0, 1024 }
  0x16   : > { %p1444_p2 = scmp.ne.s32.totalorder %s1442_s14, %s1443_s20  ;;  %p1449_p5 = scmp.lt.s32.totalorder %s1442_s14, %s2183_s0 }
  0x17   : > { %p1450_p8 = scmp.lt.s32.totalorder %s1448_s25, %s1443_s20 }
  0x18   : > { %p1446_p4 = pnand %p1445_p3, %p1444_p2 }
  0x19   : > { %p1451_p10 = por %p1450_p8, %p1449_p5 }
  0x1a   : > { %p1447_p7 = pneg %p1446_p4 }
  0x1c   : > { %p1452_p9 = pnand %p1451_p10, %p1447_p7 }
  0x1e   : > { %1455 = shalt.err (!%p1452_p9)
}
  0x1f   : > { %s1539_s29 = smov 256   ;;  %s1540_s6 = smov 16  }
  0x20   : > { %1376 = dma.hbm_to_vmem [thread:$0]  (!%p1634_p13), %s174_s9, 8192, %s176_s11, %s163_s13, %s1539_s29, %s1539_s29, %s1540_s6  }
  0x21   : > { %p184_p2 = pnand %p1208_p0, %p183_p1 }
  0x23   : > { %187 = sbr.rel (%p184_p2) target bundleno = 839 (0x347), region = 36 }
  0x28   : > { %s1655_s7 = sand.u32 1, %s1529_s16  }
  0x29   : > { %s1209_s8 = sshll.u32 %s1655_s7, 9  ;;  %s190_s10 = scalar_lea.sflag [#allocation3], %s1655_s7 }
  0x2a   : > { %s1661_s14 = scalar_lea.vmem [#allocation2], %s1209_s8 }
  0x2b   : > { %1516 = dma.done.wait (%p1612_p6), %s190_s10, 8192  }
  0x2c   : > { %1518 = vsyncadd (%p1612_p6), %s190_s10, 4294959104  ;;  %v1235_v0 = vld [vmem:[%s1661_s14 + $0xf0] sm:$0xff]  ;;  %v1236_v1 = vld [vmem:[%s1661_s14 + $0xf8] sm:$0xff]  ;;  %vm281_vm0 = vcmask 523264   ;;  %vm313_vm1 = vcmask 130048   ;;  %s2013_s5 = scalar_lea.vmem [#allocation5], %s1209_s8 }
  0x2d   : > { %v1670_v2 = vld [vmem:[%s1661_s14 + $0x70] sm:$0xff]  ;;  %v513_v3 = vadd.f32 %v1236_v1, %v1235_v0  ;;  %v1673_v4 = vld [vmem:[%s1661_s14 + $0x78] sm:$0xff]  ;;  %v1233_v5 = vld [vmem:[%s1661_s14 + $0xe0] sm:$0xff]  ;;  %s1356_s8 = sshll.u32 %s1590_s19, 9  ;;  %s1125_s26 = sshll.u32 %s2013_s5, 4  ;;  %s1126_s26 = int_to_ptr.vmem [resolvable:$true] %s1125_s26 }
  0x2e   : > { %v1234_v6 = vld [vmem:[%s1661_s14 + $0xe8] sm:$0xff]  ;;  %v270_v7 = vadd.f32 %v1673_v4, %v1670_v2  ;;  %v245_v9 = vld [vmem:[%s1661_s14 + $0x60] sm:$0xff]  ;;  %v243_v10 = vld [vmem:[%s1661_s14 + $0x50] sm:$0xff]  ;;  %s1124_s10 = scalar_lea.hbm %s2187_s4, %s1356_s8  ;;  %s1112_s19 = scalar_lea.sflag [#allocation4], %s1655_s7 }
  0x2f   : > { %v510_v8 = vadd.f32 %v1234_v6, %v1233_v5  ;;  %514 = vadd.xlane.f32.xlu1 %v513_v3  ;;  %v244_v11 = vld [vmem:[%s1661_s14 + $0x58] sm:$0xff]  ;;  %v246_v12 = vld [vmem:[%s1661_s14 + $0x68] sm:$0xff]  ;;  %v1684_v13 = vld [vmem:[%s1661_s14 + $0x40] sm:$0xff]  ;;  %s1127_s9 = sshll.u32 %s1124_s10, 4  ;;  %s1491_s22 = scalar_lea.hbm %s2187_s4, 1024  ;;  %s1128_s9 = int_to_ptr.hbm [resolvable:$true] %s1127_s9 }
  0x30   : > { %271 = vadd.xlane.f32.xlu0 %v270_v7  ;;  %v1687_v14 = vld [vmem:[%s1661_s14 + $0x48] sm:$0xff]  ;;  %v264_v15 = vadd.f32 %v244_v11, %v243_v10  ;;  %v267_v16 = vadd.f32 %v246_v12, %v245_v9  ;;  %v1231_v18 = vld [vmem:[%s1661_s14 + $0xd0] sm:$0xff]  ;;  %v1696_v20 = vld [vmem:[%s1661_s14 + $0x38] sm:$0xff]  ;;  %s1485_s11 = sshra.s32 %s1128_s9, 4  ;;  %s1486_s11 = int_to_ptr.hbm [resolvable:$true] %s1485_s11 }
  0x31   : > { %511 = vadd.xlane.f32.xlu2 %v510_v8  ;;  %v261_v17 = vadd.f32 %v1687_v14, %v1684_v13  ;;  %v1693_v19 = vld [vmem:[%s1661_s14 + $0x30] sm:$0xff]  ;;  %v1232_v21 = vld [vmem:[%s1661_s14 + $0xd8] sm:$0xff]  ;;  %v1700_v22 = vld [vmem:[%s1661_s14 + $0xc0] sm:$0xff]  ;;  %s1487_s12 = scalar_lea.hbm %s1486_s11, 512  ;;  %p1492_p0 = scmp.lt.s32.totalorder %s1486_s11, %s2187_s4 }
  0x32   : > { %v1703_v23 = vld [vmem:[%s1661_s14 + $0xc8] sm:$0xff]  ;;  %v258_v24 = vadd.f32 %v1696_v20, %v1693_v19  ;;  %v507_v25 = vadd.f32 %v1232_v21, %v1231_v18  ;;  %v1710_v27 = vld [vmem:[%s1661_s14 + $0xb0] sm:$0xff]  ;;  %v1713_v28 = vld [vmem:[%s1661_s14 + $0xb8] sm:$0xff]  ;;  %p1488_p6 = scmp.ne.s32.totalorder %s1486_s11, %s1487_s12  ;;  %p1493_p1 = scmp.lt.s32.totalorder %s1491_s22, %s1487_s12 }
  0x33   : > { %v504_v26 = vadd.f32 %v1703_v23, %v1700_v22  ;;  %v1716_v29 = vld [vmem:[%s1661_s14 + $0x20] sm:$0xff]  ;;  %v1719_v30 = vld [vmem:[%s1661_s14 + $0x28] sm:$0xff]  ;;  %v1722_v31 = vld [vmem:[%s1661_s14 + $0x10] sm:$0xff]  ;;  %v501_v33 = vadd.f32 %v1713_v28, %v1710_v27 }
  0x34   : > { %v1725_v32 = vld [vmem:[%s1661_s14 + $0x18] sm:$0xff]  ;;  %v255_v34 = vadd.f32 %v1719_v30, %v1716_v29  ;;  %v1734_v36 = vld [vmem:[%s1661_s14 + $0xa0] sm:$0xff]  ;;  %v1740_v38 = vld [vmem:[%s1661_s14 + $0x8] sm:$0xff]  ;;  %p1489_p9 = pnand %p1488_p6, %p1619_p11  ;;  %p1494_p3 = por %p1493_p1, %p1492_p0 }
  0x35   : > { %v252_v35 = vadd.f32 %v1725_v32, %v1722_v31  ;;  %v1737_v37 = vld [vmem:[%s1661_s14] sm:$0xff]  ;;  %v1743_v39 = vld [vmem:[%s1661_s14 + $0xa8] sm:$0xff]  ;;  %v1746_v40 = vld [vmem:[%s1661_s14 + $0x90] sm:$0xff] }
  0x36   : > { %v1749_v41 = vld [vmem:[%s1661_s14 + $0x98] sm:$0xff]  ;;  %v249_v42 = vadd.f32 %v1740_v38, %v1737_v37  ;;  %v498_v43 = vadd.f32 %v1743_v39, %v1734_v36  ;;  %v1758_v45 = vld [vmem:[%s1661_s14 + $0x80] sm:$0xff]  ;;  %v1277_v46 = vld [vmem:[%s1661_s14 + $0x170] sm:$0xff]  ;;  %p1490_p13 = pneg %p1489_p9 }
  0x37   : > { %265 = vadd.xlane.f32.xlu1 %v264_v15  ;;  %v495_v44 = vadd.f32 %v1749_v41, %v1746_v40  ;;  %v1278_v47 = vld [vmem:[%s1661_s14 + $0x178] sm:$0xff]  ;;  %v1763_v48 = vld [vmem:[%s1661_s14 + $0x88] sm:$0xff]  ;;  %v1275_v49 = vld [vmem:[%s1661_s14 + $0x160] sm:$0xff] }
  0x38   : > { %268 = vadd.xlane.f32.xlu0 %v267_v16  ;;  %v1276_v50 = vld [vmem:[%s1661_s14 + $0x168] sm:$0xff]  ;;  %v725_v51 = vadd.f32 %v1278_v47, %v1277_v46  ;;  %v492_v52 = vadd.f32 %v1763_v48, %v1758_v45  ;;  %v1770_v54 = vld [vmem:[%s1661_s14 + $0x150] sm:$0xff]  ;;  %v1773_v55 = vld [vmem:[%s1661_s14 + $0x140] sm:$0xff]  ;;  %p1495_p4 = pnand %p1494_p3, %p1490_p13 }
  0x39   : > { %262 = vadd.xlane.f32.xlu2 %v261_v17  ;;  %v722_v53 = vadd.f32 %v1276_v50, %v1275_v49  ;;  %2208 = vst [vmem:[#allocation8_spill] sm:$0xff] %v1773_v55  ;;  %v1776_v56 = vld [vmem:[%s1661_s14 + $0x148] sm:$0xff]  ;;  %v1779_v57 = vld [vmem:[%s1661_s14 + $0x158] sm:$0xff]  ;;  %v1782_v58 = vld [vmem:[%s1661_s14 + $0x130] sm:$0xff] }
  0x3a   : > { %2209 = vst [vmem:[#allocation9_spill] sm:$0xff] %v1776_v56  ;;  %v1785_v59 = vld [vmem:[%s1661_s14 + $0x138] sm:$0xff]  ;;  %v716_v60 = vadd.f32 %v1776_v56, %v1773_v55  ;;  %v719_v61 = vadd.f32 %v1779_v57, %v1770_v54  ;;  %v1794_v63 = vld [vmem:[%s1661_s14 + $0x120] sm:$0xff]  ;;  %v1797_v0 = vld [vmem:[%s1661_s14 + $0x110] sm:$0xff] }
  0x3b   : > { %2210 = vst [vmem:[#allocation10_spill] sm:$0xff] %v1785_v59  ;;  %v713_v62 = vadd.f32 %v1785_v59, %v1782_v58  ;;  %v1800_v1 = vld [vmem:[%s1661_s14 + $0x118] sm:$0xff]  ;;  %v1803_v3 = vld [vmem:[%s1661_s14 + $0x128] sm:$0xff]  ;;  %v1806_v5 = vld [vmem:[%s1661_s14 + $0x100] sm:$0xff] }
  0x3c   : > { %v1809_v6 = vld [vmem:[%s1661_s14 + $0x108] sm:$0xff]  ;;  %v707_v7 = vadd.f32 %v1800_v1, %v1797_v0  ;;  %v710_v8 = vadd.f32 %v1803_v3, %v1794_v63 }
  0x3d   : > { %v704_v9 = vadd.f32 %v1809_v6, %v1806_v5 }
  0x3f   : > { %259 = vadd.xlane.f32.xlu1 %v258_v24 }
  0x40   : > { %508 = vadd.xlane.f32.xlu0 %v507_v25 }
  0x41   : > { %505 = vadd.xlane.f32.xlu2 %v504_v26 }
  0x47   : > { %502 = vadd.xlane.f32.xlu1 %v501_v33 }
  0x48   : > { %256 = vadd.xlane.f32.xlu0 %v255_v34 }
  0x49   : > { %253 = vadd.xlane.f32.xlu2 %v252_v35 }
  0x4f   : > { %250 = vadd.xlane.f32.xlu1 %v249_v42 }
  0x50   : > { %499 = vadd.xlane.f32.xlu0 %v498_v43 }
  0x51   : > { %496 = vadd.xlane.f32.xlu2 %v495_v44 }
  0x57   : > { %726 = vadd.xlane.f32.xlu1 %v725_v51 }
  0x58   : > { %493 = vadd.xlane.f32.xlu0 %v492_v52 }
  0x59   : > { %723 = vadd.xlane.f32.xlu2 %v722_v53 }
  0x5f   : > { %717 = vadd.xlane.f32.xlu1 %v716_v60 }
  0x60   : > { %720 = vadd.xlane.f32.xlu0 %v719_v61 }
  0x61   : > { %714 = vadd.xlane.f32.xlu2 %v713_v62 }
  0x67   : > { %708 = vadd.xlane.f32.xlu1 %v707_v7 }
  0x68   : > { %711 = vadd.xlane.f32.xlu0 %v710_v8  ;;  %v1820_v8 = vld [vmem:[%s2184_s1] sm:$0xff] }
  0x69   : > { %705 = vadd.xlane.f32.xlu2 %v704_v9 }
  0xa2   : > { %v515_v10 = vpop.xlane.xlu1 %514 }
  0xa3   : > { %v272_v11 = vpop.xlane.xlu0 %271  ;;  %v523_v15 = vmul.f32 0.00390625, %v515_v10 }
  0xa4   : > { %v512_v12 = vpop.xlane.xlu2 %511  ;;  %v280_v16 = vmul.f32 0.00390625, %v272_v11 }
  0xa5   : > { %v522_v17 = vmul.f32 0.00390625, %v512_v12  ;;  %532 = vmatpush.msra.mxu2 %v523_v15  ;;  %v1827_v12 = vld [vmem:[%s2184_s1 + $0x8] sm:$0xff] }
  0xa6   : > { %296 = vmatpush.msra.mxu0 %v280_v16 }
  0xa7   : > { %533 = vmatpush.msra.mxu2 %v522_v17 }
  0xaa   : > { %v266_v18 = vpop.xlane.xlu1 %265 }
  0xab   : > { %v269_v21 = vpop.xlane.xlu0 %268  ;;  %v278_v26 = vmul.f32 0.00390625, %v266_v18  ;;  %v1319_v18 = vld [vmem:[%s1661_s14 + $0x1f0] sm:$0xff] }
  0xac   : > { %v263_v24 = vpop.xlane.xlu2 %262  ;;  %v279_v25 = vmul.f32 0.00390625, %v269_v21  ;;  %v1320_v21 = vld [vmem:[%s1661_s14 + $0x1f8] sm:$0xff] }
  0xad   : > { %v277_v33 = vmul.f32 0.00390625, %v263_v24  ;;  %v1832_v24 = vld [vmem:[%s1661_s14 + $0x1e0] sm:$0xff] }
  0xae   : > { %297 = vmatpush.msra.mxu0 %v279_v25  ;;  %2211 = vst [vmem:[#allocation11_spill] sm:$0xff] %v1832_v24 }
  0xb0   : > { %298 = vmatpush.msra.mxu0 %v278_v26 }
  0xb2   : > { %v260_v34 = vpop.xlane.xlu1 %259  ;;  %299 = vmatpush.msra.mxu0 %v277_v33  ;;  %v937_v33 = vadd.f32 %v1320_v21, %v1319_v18  ;;  %v1878_v21 = vld [vmem:[%s1661_s14 + $0x180] sm:$0xff] }
  0xb3   : > { %v509_v35 = vpop.xlane.xlu0 %508  ;;  %v276_v42 = vmul.f32 0.00390625, %v260_v34  ;;  %v1835_v34 = vld [vmem:[%s1661_s14 + $0x1e8] sm:$0xff]  ;;  %2221 = vst [vmem:[#allocation21_spill] sm:$0xff] %v1878_v21 }
  0xb4   : > { %v506_v43 = vpop.xlane.xlu2 %505  ;;  %v521_v44 = vmul.f32 0.00390625, %v509_v35  ;;  %2212 = vst [vmem:[#allocation12_spill] sm:$0xff] %v1835_v34  ;;  %v1315_v35 = vld [vmem:[%s1661_s14 + $0x1d0] sm:$0xff]  ;;  %938 = vadd.xlane.f32.xlu0 %v937_v33 }
  0xb5   : > { %v520_v46 = vmul.f32 0.00390625, %v506_v43  ;;  %300 = vmatpush.msra.mxu0 %v276_v42  ;;  %v1316_v42 = vld [vmem:[%s1661_s14 + $0x1d8] sm:$0xff]  ;;  %v934_v43 = vadd.f32 %v1835_v34, %v1832_v24 }
  0xb6   : > { %534 = vmatpush.msra.mxu2 %v521_v44  ;;  %v931_v44 = vadd.f32 %v1316_v42, %v1315_v35 }
  0xb7   : > { %935 = vadd.xlane.f32.xlu1 %v934_v43 }
  0xb8   : > { %535 = vmatpush.msra.mxu2 %v520_v46  ;;  %932 = vadd.xlane.f32.xlu2 %v931_v44  ;;  %v1846_v46 = vld [vmem:[%s1661_s14 + $0x1c0] sm:$0xff] }
  0xb9   : > { %2213 = vst [vmem:[#allocation13_spill] sm:$0xff] %v1846_v46 }
  0xba   : > { %v503_v47 = vpop.xlane.xlu1 %502 }
  0xbb   : > { %v519_v49 = vmul.f32 0.00390625, %v503_v47  ;;  %v257_v50 = vpop.xlane.xlu0 %256  ;;  %v1849_v47 = vld [vmem:[%s1661_s14 + $0x1c8] sm:$0xff] }
  0xbc   : > { %v254_v51 = vpop.xlane.xlu2 %253  ;;  %v275_v52 = vmul.f32 0.00390625, %v257_v50  ;;  %2214 = vst [vmem:[#allocation14_spill] sm:$0xff] %v1849_v47 }
  0xbd   : > { %v274_v53 = vmul.f32 0.00390625, %v254_v51  ;;  %536 = vmatpush.msra.mxu2 %v519_v49  ;;  %v1852_v49 = vld [vmem:[%s1661_s14 + $0x1b0] sm:$0xff]  ;;  %v1855_v51 = vld [vmem:[%s1661_s14 + $0x1b8] sm:$0xff] }
  0xbe   : > { %301 = vmatpush.msra.mxu0 %v275_v52  ;;  %2215 = vst [vmem:[#allocation15_spill] sm:$0xff] %v1852_v49  ;;  %v1858_v52 = vld [vmem:[%s1661_s14 + $0x1a0] sm:$0xff] }
  0xbf   : > { %2216 = vst [vmem:[#allocation16_spill] sm:$0xff] %v1855_v51 }
  0xc0   : > { %302 = vmatpush.msra.mxu0 %v274_v53  ;;  %2217 = vst [vmem:[#allocation17_spill] sm:$0xff] %v1858_v52  ;;  %v1861_v53 = vld [vmem:[%s1661_s14 + $0x1a8] sm:$0xff] }
  0xc1   : > { %2218 = vst [vmem:[#allocation18_spill] sm:$0xff] %v1861_v53 }
  0xc2   : > { %v251_v60 = vpop.xlane.xlu1 %250 }
  0xc3   : > { %v500_v61 = vpop.xlane.xlu0 %499  ;;  %v273_v62 = vmul.f32 0.00390625, %v251_v60 }
  0xc4   : > { %v497_v7 = vpop.xlane.xlu2 %496  ;;  %v518_v9 = vmul.f32 0.00390625, %v500_v61 }
  0xc5   : > { %v517_v10 = vmul.f32 0.00390625, %v497_v7  ;;  %303 = vmatpush.msra.mxu0 %v273_v62 }
  0xc6   : > { %537 = vmatpush.msra.mxu2 %v518_v9  ;;  %1211 = vmatmul.msk.f32.vlgmr.msra.gmra.mxu0 %vm281_vm0, %v1820_v8  ;;  %v928_v9 = vadd.f32 %v1849_v47, %v1846_v46 }
  0xc8   : > { %538 = vmatpush.msra.mxu2 %v517_v10  ;;  %v925_v10 = vadd.f32 %v1855_v51, %v1852_v49  ;;  %929 = vadd.xlane.f32.xlu0 %v928_v9 }
  0xca   : > { %v727_v11 = vpop.xlane.xlu1 %726  ;;  %926 = vadd.xlane.f32.xlu1 %v925_v10 }
  0xcb   : > { %v494_v15 = vpop.xlane.xlu0 %493  ;;  %v735_v16 = vmul.f32 0.00390625, %v727_v11  ;;  %v922_v11 = vadd.f32 %v1861_v53, %v1858_v52 }
  0xcc   : > { %v724_v17 = vpop.xlane.xlu2 %723  ;;  %v516_v25 = vmul.f32 0.00390625, %v494_v15 }
  0xcd   : > { %v734_v26 = vmul.f32 0.00390625, %v724_v17  ;;  %744 = vmatpush.msrb.mxu0 %v735_v16  ;;  %923 = vadd.xlane.f32.xlu2 %v922_v11  ;;  %v1872_v16 = vld [vmem:[%s1661_s14 + $0x190] sm:$0xff]  ;;  %v1875_v17 = vld [vmem:[%s1661_s14 + $0x198] sm:$0xff] }
  0xce   : > { %539 = vmatpush.msra.mxu2 %v516_v25  ;;  %1212 = vmatmul.msk.f32.gmra.mxu0 %vm281_vm0, %v1827_v12  ;;  %2219 = vst [vmem:[#allocation19_spill] sm:$0xff] %v1872_v16  ;;  %v1881_v25 = vld [vmem:[%s1661_s14 + $0x188] sm:$0xff]  ;;  %v919_v43 = vadd.f32 %v1875_v17, %v1872_v16 }
  0xcf   : > { %1237 = vmatmul.msk.f32.vlgmr.msra.gmra.mxu2 %vm281_vm0, %v1820_v8  ;;  %745 = vmatpush.msrb.mxu0 %v734_v26  ;;  %2220 = vst [vmem:[#allocation20_spill] sm:$0xff] %v1875_v17  ;;  %v916_v44 = vadd.f32 %v1881_v25, %v1878_v21 }
  0xd0   : > { %2222 = vst [vmem:[#allocation22_spill] sm:$0xff] %v1881_v25  ;;  %920 = vadd.xlane.f32.xlu0 %v919_v43 }
  0xd2   : > { %v718_v50 = vpop.xlane.xlu1 %717  ;;  %917 = vadd.xlane.f32.xlu1 %v916_v44 }
  0xd3   : > { %v721_v60 = vpop.xlane.xlu0 %720  ;;  %v732_v7 = vmul.f32 0.00390625, %v718_v50 }
  0xd4   : > { %v715_v61 = vpop.xlane.xlu2 %714  ;;  %v733_v62 = vmul.f32 0.00390625, %v721_v60 }
  0xd5   : > { %v731_v15 = vmul.f32 0.00390625, %v715_v61  ;;  %v1894_v61 = vld [vmem:[%s2185_s2] sm:$0xff] }
  0xd6   : > { %746 = vmatpush.msrb.mxu0 %v733_v62  ;;  %v1899_v62 = vld [vmem:[%s2185_s2 + $0x8] sm:$0xff] }
  0xd7   : > { %1238 = vmatmul.msk.f32.gmra.mxu2 %vm281_vm0, %v1827_v12 }
  0xd8   : > { %747 = vmatpush.msrb.mxu0 %v732_v7 }
  0xda   : > { %748 = vmatpush.msrb.mxu0 %v731_v15  ;;  %v709_v18 = vpop.xlane.xlu1 %708 }
  0xdb   : > { %v712_v26 = vpop.xlane.xlu0 %711  ;;  %v729_v42 = vmul.f32 0.00390625, %v709_v18  ;;  %v1906_v18 = vld [vmem:[%s2186_s3] sm:$0xff] }
  0xdc   : > { %v706_v33 = vpop.xlane.xlu2 %705  ;;  %v730_v35 = vmul.f32 0.00390625, %v712_v26  ;;  %v1911_v26 = vld [vmem:[%s2186_s3 + $0x38] sm:$0xff] }
  0xdd   : > { %v728_v50 = vmul.f32 0.00390625, %v706_v33 }
  0xde   : > { %749 = vmatpush.msrb.mxu0 %v730_v35  ;;  %v1920_v35 = vld [vmem:[%s2186_s3 + $0x8] sm:$0xff] }
  0xe0   : > { %750 = vmatpush.msrb.mxu0 %v729_v42 }
  0xe2   : > { %751 = vmatpush.msrb.mxu0 %v728_v50 }
  0xe3   : > { %1279 = vmatmul.msk.f32.vlgmr.msrb.gmra.mxu0 %vm281_vm0, %v1820_v8 }
  0xeb   : > { %1280 = vmatmul.msk.f32.gmra.mxu0 %vm281_vm0, %v1827_v12 }
 0x143   : > { %v305_v60 = vpop.f32.mrf.mxu0 }
 0x144   : > { %v306_v9 = vadd.f32 %v305_v60, %v1894_v61 }
 0x146   : > { %v311_v15 = vmax.f32 %v306_v9, 0.0  ;;  %v1929_v9 = vld [vmem:[%s2186_s3 + $0x10] sm:$0xff] }
 0x14b   : > { %v308_v7 = vpop.f32.mrf.mxu0 }
 0x14c   : > { %v309_v10 = vadd.f32 %v308_v7, %v1899_v62 }
 0x14e   : > { %v312_v11 = vmax.f32 %v309_v10, 0.0 }
 0x150   : > { %352 = vmatpush.msra.mxu1 %v312_v11  ;;  %1357 = vmatpush.msra.mxu3 %v312_v11 }
 0x152   : > { %v541_v33 = vpop.f32.mrf.mxu2  ;;  %353 = vmatpush.msra.mxu1 %v311_v15  ;;  %1358 = vmatpush.msra.mxu3 %v311_v15  ;;  %v1939_v15 = vld [vmem:[%s2186_s3 + $0x18] sm:$0xff] }
 0x153   : > { %1213 = vmatmul.msk.f32.vlgmr.msra.gmra.mxu1 %vm313_vm1, %v1906_v18  ;;  %1220 = vmatmul.msk.f32.vlgmr.msra.gmra.mxu3 %vm313_vm1, %v1911_v26  ;;  %v542_v43 = vadd.f32 %v541_v33, %v1894_v61 }
 0x155   : > { %v547_v60 = vmax.f32 %v542_v43, 0.0  ;;  %v936_v43 = vpop.xlane.xlu1 %935 }
 0x15a   : > { %v544_v42 = vpop.f32.mrf.mxu2 }
 0x15b   : > { %v545_v44 = vadd.f32 %v544_v42, %v1899_v62  ;;  %1214 = vmatmul.msk.f32.gmra.mxu1 %vm313_vm1, %v1920_v35  ;;  %v939_v42 = vpop.xlane.xlu0 %938 }
 0x15d   : > { %v548_v50 = vmax.f32 %v545_v44, 0.0 }
 0x15f   : > { %563 = vmatpush.msrb.mxu3 %v548_v50 }
 0x160   : > { %v753_v7 = vpop.f32.mrf.mxu0 }
 0x161   : > { %564 = vmatpush.msrb.mxu3 %v547_v60  ;;  %v754_v10 = vadd.f32 %v753_v7, %v1894_v61  ;;  %v947_v60 = vmul.f32 0.00390625, %v939_v42  ;;  %v946_v7 = vmul.f32 0.00390625, %v936_v43  ;;  %v927_v43 = vpop.xlane.xlu1 %926 }
 0x162   : > { %1239 = vmatmul.msk.f32.vlgmr.msrb.gmra.mxu3 %vm313_vm1, %v1906_v18 }
 0x163   : > { %1215 = vmatmul.msk.f32.gmra.mxu1 %vm313_vm1, %v1929_v9  ;;  %v759_v44 = vmax.f32 %v754_v10, 0.0  ;;  %956 = vmatpush.msra.mxu0 %v947_v60  ;;  %v933_v10 = vpop.xlane.xlu2 %932  ;;  %v930_v42 = vpop.xlane.xlu0 %929 }
 0x164   : > { %1359 = vmatpush.msra.mxu3 %v947_v60  ;;  %v1962_v60 = vld [vmem:[%s2186_s3 + $0x28] sm:$0xff] }
 0x165   : > { %957 = vmatpush.msra.mxu0 %v946_v7 }
 0x166   : > { %1360 = vmatpush.msra.mxu3 %v946_v7 }
 0x168   : > { %v756_v11 = vpop.f32.mrf.mxu0 }
 0x169   : > { %v757_v33 = vadd.f32 %v756_v11, %v1899_v62  ;;  %v1951_v11 = vld [vmem:[%s2186_s3 + $0x20] sm:$0xff] }
 0x16a   : > { %1240 = vmatmul.msk.f32.gmra.mxu3 %vm313_vm1, %v1920_v35 }
 0x16b   : > { %v760_v50 = vmax.f32 %v757_v33, 0.0  ;;  %1216 = vmatmul.msk.f32.gmra.mxu1 %vm313_vm1, %v1939_v15  ;;  %v945_v33 = vmul.f32 0.00390625, %v933_v10  ;;  %v924_v7 = vpop.xlane.xlu2 %923 }
 0x16c   : > { %v942_v10 = vmul.f32 0.00390625, %v924_v7 }
 0x16d   : > { %775 = vmatpush.msrb.mxu2 %v760_v50  ;;  %958 = vmatpush.msra.mxu0 %v945_v33  ;;  %v943_v50 = vmul.f32 0.00390625, %v927_v43  ;;  %v918_v43 = vpop.xlane.xlu1 %917 }
 0x16e   : > { %1361 = vmatpush.msra.mxu3 %v945_v33 }
 0x16f   : > { %776 = vmatpush.msrb.mxu2 %v759_v44  ;;  %v944_v44 = vmul.f32 0.00390625, %v930_v42  ;;  %v921_v42 = vpop.xlane.xlu0 %920 }
 0x170   : > { %1281 = vmatmul.msk.f32.vlgmr.msrb.gmra.mxu2 %vm313_vm1, %v1906_v18  ;;  %v941_v33 = vmul.f32 0.00390625, %v921_v42 }
 0x171   : > { %959 = vmatpush.msra.mxu0 %v944_v44  ;;  %1362 = vmatpush.msra.mxu3 %v944_v44  ;;  %v940_v44 = vmul.f32 0.00390625, %v918_v43 }
 0x172   : > { %1241 = vmatmul.msk.f32.gmra.mxu3 %vm313_vm1, %v1929_v9 }
 0x173   : > { %1217 = vmatmul.msk.f32.gmra.mxu1 %vm313_vm1, %v1951_v11  ;;  %960 = vmatpush.msra.mxu0 %v943_v50 }
 0x174   : > { %1363 = vmatpush.msra.mxu3 %v943_v50  ;;  %v1977_v50 = vld [vmem:[%s2186_s3 + $0x30] sm:$0xff] }
 0x175   : > { %961 = vmatpush.msra.mxu0 %v942_v10 }
 0x176   : > { %1364 = vmatpush.msra.mxu3 %v942_v10 }
 0x177   : > { %962 = vmatpush.msra.mxu0 %v941_v33 }
 0x178   : > { %1282 = vmatmul.msk.f32.gmra.mxu2 %vm313_vm1, %v1920_v35  ;;  %1365 = vmatpush.msra.mxu3 %v941_v33 }
 0x179   : > { %963 = vmatpush.msra.mxu0 %v940_v44 }
 0x17a   : > { %1242 = vmatmul.msk.f32.gmra.mxu3 %vm313_vm1, %v1939_v15  ;;  %1321 = vmatmul.msk.f32.vlgmr.msra.gmra.mxu0 %vm281_vm0, %v1820_v8  ;;  %v1541_v8 = vmov 0  }
 0x17b   : > { %1218 = vmatmul.msk.f32.gmra.mxu1 %vm313_vm1, %v1962_v60  ;;  %1366 = vmatpush.msra.mxu3 %v940_v44 }
 0x17c   : > { %1422 = vset.pattern.permute.xlu0 %v1541_v8  ;;  %1421 = vset.pattern.permute.xlu1 %v1541_v8 }
 0x17d   : > { %1420 = vset.pattern.permute.xlu2 %v1541_v8 }
 0x180   : > { %1283 = vmatmul.msk.f32.gmra.mxu2 %vm313_vm1, %v1929_v9 }
 0x182   : > { %1243 = vmatmul.msk.f32.gmra.mxu3 %vm313_vm1, %v1951_v11 }
 0x183   : > { %1219 = vmatmul.msk.f32.gmra.mxu1 %vm313_vm1, %v1977_v50 }
 0x188   : > { %1284 = vmatmul.msk.f32.gmra.mxu2 %vm313_vm1, %v1939_v15 }
 0x18a   : > { %1244 = vmatmul.msk.f32.gmra.mxu3 %vm313_vm1, %v1962_v60 }
 0x190   : > { %1285 = vmatmul.msk.f32.gmra.mxu2 %vm313_vm1, %v1951_v11 }
 0x192   : > { %1245 = vmatmul.msk.f32.gmra.mxu3 %vm313_vm1, %v1977_v50 }
 0x198   : > { %1286 = vmatmul.msk.f32.gmra.mxu2 %vm313_vm1, %v1962_v60 }
 0x19a   : > { %1246 = vmatmul.msk.f32.gmra.mxu3 %vm313_vm1, %v1911_v26 }
 0x1a0   : > { %1287 = vmatmul.msk.f32.gmra.mxu2 %vm313_vm1, %v1977_v50 }
 0x1a2   : > { %1322 = vmatmul.msk.f32.vlgmr.msra.gmra.mxu3 %vm281_vm0, %v1827_v12 }
 0x1a8   : > { %1288 = vmatmul.msk.f32.gmra.mxu2 %vm313_vm1, %v1911_v26 }
 0x1d0   : > { %v355_v7 = vpop.f32.mrf.mxu1 }
 0x1d1   : > { %v356_v10 = vadd.f32 3.0, %v355_v7 }
 0x1d3   : > { %v379_v42 = vmax.f32 %v356_v10, 0.0 }
 0x1d5   : > { %v387_v43 = vmin.f32 %v379_v42, 6.0 }
 0x1d6   : > { %v376_v33 = vpop.f32.mrf.mxu3 }
 0x1d7   : > { %v395_v44 = vmul.f32 0.16666667, %v387_v43  ;;  %v377_v53 = vadd.f32 3.0, %v376_v33 }
 0x1d8   : > { %v358_v52 = vpop.f32.mrf.mxu1 }
 0x1d9   : > { %v359_v34 = vadd.f32 3.0, %v358_v52  ;;  %v386_v24 = vmax.f32 %v377_v53, 0.0  ;;  %405 = vperm.xlu2 %1420, %v395_v44  }
 0x1db   : > { %v380_v17 = vmax.f32 %v359_v34, 0.0  ;;  %v394_v12 = vmin.f32 %v386_v24, 6.0 }
 0x1dd   : > { %v388_v16 = vmin.f32 %v380_v17, 6.0  ;;  %v402_v51 = vmul.f32 0.16666667, %v394_v12 }
 0x1df   : > { %v396_v49 = vmul.f32 0.16666667, %v388_v16  ;;  %440 = vperm.xlu1 %1421, %v402_v51  }
 0x1e0   : > { %v361_v47 = vpop.f32.mrf.mxu1 }
 0x1e1   : > { %410 = vperm.xlu0 %1422, %v396_v49   ;;  %v362_v8 = vadd.f32 3.0, %v361_v47 }
 0x1e3   : > { %v381_v46 = vmax.f32 %v362_v8, 0.0 }
 0x1e5   : > { %v566_v7 = vpop.f32.mrf.mxu3  ;;  %v389_v10 = vmin.f32 %v381_v46, 6.0 }
 0x1e6   : > { %v567_v42 = vadd.f32 3.0, %v566_v7 }
 0x1e7   : > { %v397_v25 = vmul.f32 0.16666667, %v389_v10 }
 0x1e8   : > { %v590_v43 = vmax.f32 %v567_v42, 0.0  ;;  %v364_v33 = vpop.f32.mrf.mxu1 }
 0x1e9   : > { %415 = vperm.xlu1 %1421, %v397_v25   ;;  %v365_v24 = vadd.f32 3.0, %v364_v33 }
 0x1ea   : > { %v598_v52 = vmin.f32 %v590_v43, 6.0 }
 0x1eb   : > { %v382_v12 = vmax.f32 %v365_v24, 0.0 }
 0x1ec   : > { %v606_v53 = vmul.f32 0.16666667, %v598_v52 }
 0x1ed   : > { %v569_v44 = vpop.f32.mrf.mxu3  ;;  %v390_v7 = vmin.f32 %v382_v12, 6.0 }
 0x1ee   : > { %v570_v34 = vadd.f32 3.0, %v569_v44  ;;  %616 = vperm.xlu0 %1422, %v606_v53  }
 0x1ef   : > { %v398_v56 = vmul.f32 0.16666667, %v390_v7 }
 0x1f0   : > { %v591_v17 = vmax.f32 %v570_v34, 0.0  ;;  %v367_v16 = vpop.f32.mrf.mxu1 }
 0x1f1   : > { %v368_v46 = vadd.f32 3.0, %v367_v16 }
 0x1f2   : > { %v599_v51 = vmin.f32 %v591_v17, 6.0 }
 0x1f3   : > { %v778_v49 = vpop.f32.mrf.mxu2  ;;  %v383_v43 = vmax.f32 %v368_v46, 0.0 }
 0x1f4   : > { %v607_v47 = vmul.f32 0.16666667, %v599_v51  ;;  %v779_v8 = vadd.f32 3.0, %v778_v49 }
 0x1f5   : > { %v572_v21 = vpop.f32.mrf.mxu3  ;;  %v391_v24 = vmin.f32 %v383_v43, 6.0 }
 0x1f6   : > { %v802_v10 = vmax.f32 %v779_v8, 0.0  ;;  %v573_v42 = vadd.f32 3.0, %v572_v21  ;;  %621 = vperm.xlu2 %1420, %v607_v47  }
 0x1f7   : > { %v399_v21 = vmul.f32 0.16666667, %v391_v24 }
 0x1f8   : > { %v810_v25 = vmin.f32 %v802_v10, 6.0  ;;  %v370_v52 = vpop.f32.mrf.mxu1  ;;  %v592_v53 = vmax.f32 %v573_v42, 0.0 }
 0x1f9   : > { %v371_v17 = vadd.f32 3.0, %v370_v52 }
 0x1fa   : > { %v818_v44 = vmul.f32 0.16666667, %v810_v25  ;;  %v600_v51 = vmin.f32 %v592_v53, 6.0 }
 0x1fb   : > { %v781_v33 = vpop.f32.mrf.mxu2  ;;  %v384_v12 = vmax.f32 %v371_v17, 0.0 }
 0x1fc   : > { %v782_v34 = vadd.f32 3.0, %v781_v33  ;;  %828 = vperm.xlu1 %1421, %v818_v44   ;;  %v608_v47 = vmul.f32 0.16666667, %v600_v51 }
 0x1fd   : > { %v575_v55 = vpop.f32.mrf.mxu3  ;;  %v392_v7 = vmin.f32 %v384_v12, 6.0 }
 0x1fe   : > { %v803_v49 = vmax.f32 %v782_v34, 0.0  ;;  %v576_v59 = vadd.f32 3.0, %v575_v55  ;;  %420 = vperm.xlu2 %1420, %v398_v56  }
 0x1ff   : > { %v400_v43 = vmul.f32 0.16666667, %v392_v7 }
 0x200   : > { %v811_v16 = vmin.f32 %v803_v49, 6.0  ;;  %v593_v46 = vmax.f32 %v576_v59, 0.0  ;;  %v373_v34 = vpop.f32.mrf.mxu1 }
 0x201   : > { %v374_v49 = vadd.f32 3.0, %v373_v34 }
 0x202   : > { %v819_v8 = vmul.f32 0.16666667, %v811_v16  ;;  %v601_v44 = vmin.f32 %v593_v46, 6.0 }
 0x203   : > { %v784_v10 = vpop.f32.mrf.mxu2  ;;  %v385_v46 = vmax.f32 %v374_v49, 0.0 }
 0x204   : > { %v785_v25 = vadd.f32 3.0, %v784_v10  ;;  %626 = vperm.xlu1 %1421, %v608_v47   ;;  %833 = vperm.xlu0 %1422, %v819_v8   ;;  %v609_v55 = vmul.f32 0.16666667, %v601_v44 }
 0x205   : > { %v578_v42 = vpop.f32.mrf.mxu3  ;;  %v393_v44 = vmin.f32 %v385_v46, 6.0  ;;  %v965_v46 = vpop.f32.mrf.mxu0 }
 0x206   : > { %v804_v52 = vmax.f32 %v785_v25, 0.0  ;;  %425 = vperm.xlu2 %1420, %v399_v21   ;;  %v579_v33 = vadd.f32 3.0, %v578_v42 }
 0x207   : > { %v401_v34 = vmul.f32 0.16666667, %v393_v44 }
 0x208   : > { %v812_v53 = vmin.f32 %v804_v52, 6.0  ;;  %v594_v24 = vmax.f32 %v579_v33, 0.0 }
 0x20a   : > { %v820_v56 = vmul.f32 0.16666667, %v812_v53  ;;  %v602_v47 = vmin.f32 %v594_v24, 6.0 }
 0x20b   : > { %v787_v17 = vpop.f32.mrf.mxu2 }
 0x20c   : > { %v788_v51 = vadd.f32 3.0, %v787_v17  ;;  %430 = vperm.xlu1 %1421, %v400_v43   ;;  %631 = vperm.xlu0 %1422, %v609_v55   ;;  %v610_v25 = vmul.f32 0.16666667, %v602_v47 }
 0x20d   : > { %v581_v59 = vpop.f32.mrf.mxu3 }
 0x20e   : > { %v805_v16 = vmax.f32 %v788_v51, 0.0  ;;  %v582_v12 = vadd.f32 3.0, %v581_v59  ;;  %838 = vperm.xlu2 %1420, %v820_v56  }
 0x210   : > { %v813_v8 = vmin.f32 %v805_v16, 6.0  ;;  %v595_v10 = vmax.f32 %v582_v12, 0.0 }
 0x212   : > { %v821_v21 = vmul.f32 0.16666667, %v813_v8  ;;  %v603_v53 = vmin.f32 %v595_v10, 6.0 }
 0x213   : > { %v790_v7 = vpop.f32.mrf.mxu2 }
 0x214   : > { %v791_v42 = vadd.f32 3.0, %v790_v7  ;;  %843 = vperm.xlu1 %1421, %v821_v21   ;;  %v611_v17 = vmul.f32 0.16666667, %v603_v53 }
 0x215   : > { %v584_v52 = vpop.f32.mrf.mxu3 }
 0x216   : > { %v806_v33 = vmax.f32 %v791_v42, 0.0  ;;  %v585_v43 = vadd.f32 3.0, %v584_v52  ;;  %636 = vperm.xlu2 %1420, %v610_v25   ;;  %v966_v25 = vadd.f32 %v965_v46, %v1894_v61 }
 0x218   : > { %v814_v55 = vmin.f32 %v806_v33, 6.0  ;;  %v596_v56 = vmax.f32 %v585_v43, 0.0  ;;  %v971_v33 = vmax.f32 %v966_v25, 0.0 }
 0x21a   : > { %v822_v51 = vmul.f32 0.16666667, %v814_v55  ;;  %v604_v16 = vmin.f32 %v596_v56, 6.0 }
 0x21b   : > { %v793_v24 = vpop.f32.mrf.mxu2 }
 0x21c   : > { %641 = vperm.xlu1 %1421, %v611_v17   ;;  %848 = vperm.xlu0 %1422, %v822_v51   ;;  %v794_v59 = vadd.f32 3.0, %v793_v24  ;;  %v612_v21 = vmul.f32 0.16666667, %v604_v16 }
 0x21d   : > { %v587_v49 = vpop.f32.mrf.mxu3 }
 0x21e   : > { %v807_v12 = vmax.f32 %v794_v59, 0.0  ;;  %435 = vperm.xlu2 %1420, %v401_v34   ;;  %v588_v47 = vadd.f32 3.0, %v587_v49 }
 0x220   : > { %v815_v8 = vmin.f32 %v807_v12, 6.0  ;;  %v597_v7 = vmax.f32 %v588_v47, 0.0 }
 0x222   : > { %v823_v10 = vmul.f32 0.16666667, %v815_v8  ;;  %v605_v52 = vmin.f32 %v597_v7, 6.0 }
 0x224   : > { %646 = vperm.xlu0 %1422, %v612_v21   ;;  %v613_v43 = vmul.f32 0.16666667, %v605_v52 }
 0x225   : > { %v968_v42 = vpop.f32.mrf.mxu3 }
 0x226   : > { %v969_v44 = vadd.f32 %v968_v42, %v1899_v62  ;;  %853 = vperm.xlu2 %1420, %v823_v10  }
 0x228   : > { %v972_v53 = vmax.f32 %v969_v44, 0.0  ;;  %v1423_v44 = vld [vmem:[%s1661_s14 + $0x60] sm:$0xff] }
 0x22a   : > { %987 = vmatpush.msrb.mxu0 %v972_v53  ;;  %1367 = vmatpush.msrb.mxu1 %v972_v53  ;;  %v1424_v53 = vld [vmem:[%s1661_s14 + $0x68] sm:$0xff] }
 0x22c   : > { %988 = vmatpush.msrb.mxu0 %v971_v33  ;;  %1368 = vmatpush.msrb.mxu1 %v971_v33 }
 0x22d   : > { %1323 = vmatmul.msk.f32.vlgmr.msrb.gmra.mxu0 %vm313_vm1, %v1906_v18  ;;  %1327 = vmatmul.msk.f32.vlgmr.msrb.gmra.mxu1 %vm313_vm1, %v1951_v11 }
 0x22e   : > { %651 = vperm.xlu2 %1420, %v613_v43   ;;  %v1426_v43 = vld [vmem:[%s1661_s14 + $0x58] sm:$0xff] }
 0x233   : > { %v406_v61 = vpop.permute.xlu2 %405 }
 0x234   : > { %v443_v62 = vmul.f32 %v406_v61, %v1737_v37  ;;  %v444_v55 = vmul.f32 %v406_v61, %v1740_v38 }
 0x235   : > { %1324 = vmatmul.msk.f32.gmra.mxu0 %vm313_vm1, %v1920_v35  ;;  %1328 = vmatmul.msk.f32.gmra.mxu1 %vm313_vm1, %v1962_v60 }
 0x236   : > { %459 = vst [vmem:[%s2013_s5] sm:$0xff] %v443_v62 }
 0x237   : > { %460 = vst [vmem:[%s2013_s5 + $0x8] sm:$0xff] %v444_v55 }
 0x23d   : > { %1325 = vmatmul.msk.f32.gmra.mxu0 %vm313_vm1, %v1929_v9  ;;  %1329 = vmatmul.msk.f32.gmra.mxu1 %vm313_vm1, %v1977_v50  ;;  %v796_v50 = vpop.f32.mrf.mxu2 }
 0x245   : > { %1326 = vmatmul.msk.f32.gmra.mxu0 %vm313_vm1, %v1939_v15  ;;  %1330 = vmatmul.msk.f32.gmra.mxu1 %vm313_vm1, %v1911_v26 }
 0x250   : > { %v622_v37 = vpop.permute.xlu2 %621 }
 0x251   : > { %v656_v38 = vmul.f32 %v1746_v40, %v622_v37  ;;  %v657_v18 = vmul.f32 %v1749_v41, %v622_v37  ;;  %v441_v35 = vpop.permute.xlu1 %440  ;;  %v797_v40 = vadd.f32 3.0, %v796_v50 }
 0x252   : > { %v457_v9 = vmul.f32 %v441_v35, %v1670_v2  ;;  %v458_v11 = vmul.f32 %v441_v35, %v1673_v4  ;;  %v2223_v35 = vld [vmem:[#allocation10_spill] sm:$0xff] }
 0x253   : > { %1249 = vst [vmem:[%s2013_s5 + $0x90] sm:$0xff] %v656_v38  ;;  %v411_v60 = vpop.permute.xlu0 %410  ;;  %v808_v41 = vmax.f32 %v797_v40, 0.0 }
 0x254   : > { %1250 = vst [vmem:[%s2013_s5 + $0x98] sm:$0xff] %v657_v18  ;;  %v445_v15 = vmul.f32 %v411_v60, %v1722_v31  ;;  %v446_v26 = vmul.f32 %v411_v60, %v1725_v32 }
 0x255   : > { %473 = vst [vmem:[%s2013_s5 + $0x70] sm:$0xff] %v457_v9  ;;  %v816_v17 = vmin.f32 %v808_v41, 6.0 }
 0x256   : > { %474 = vst [vmem:[%s2013_s5 + $0x78] sm:$0xff] %v458_v11 }
 0x257   : > { %461 = vst [vmem:[%s2013_s5 + $0x10] sm:$0xff] %v445_v15  ;;  %v824_v56 = vmul.f32 0.16666667, %v816_v17  ;;  %v2225_v17 = vld [vmem:[#allocation9_spill] sm:$0xff] }
 0x258   : > { %462 = vst [vmem:[%s2013_s5 + $0x18] sm:$0xff] %v446_v26  ;;  %v421_v2 = vpop.permute.xlu2 %420 }
 0x259   : > { %v449_v4 = vmul.f32 %v421_v2, %v1693_v19  ;;  %v450_v34 = vmul.f32 %v421_v2, %v1696_v20  ;;  %858 = vperm.xlu1 %1421, %v824_v56   ;;  %v1430_v2 = vld [vmem:[%s1661_s14 + $0xd8] sm:$0xff] }
 0x25b   : > { %465 = vst [vmem:[%s2013_s5 + $0x30] sm:$0xff] %v449_v4  ;;  %v416_v31 = vpop.permute.xlu1 %415  ;;  %v2224_v4 = vld [vmem:[#allocation8_spill] sm:$0xff] }
 0x25c   : > { %466 = vst [vmem:[%s2013_s5 + $0x38] sm:$0xff] %v450_v34  ;;  %v447_v32 = vmul.f32 %v416_v31, %v1716_v29  ;;  %v448_v51 = vmul.f32 %v416_v31, %v1719_v30  ;;  %v799_v29 = vpop.f32.mrf.mxu2 }
 0x25d   : > { %v800_v30 = vadd.f32 3.0, %v799_v29 }
 0x25e   : > { %463 = vst [vmem:[%s2013_s5 + $0x20] sm:$0xff] %v447_v32 }
 0x25f   : > { %464 = vst [vmem:[%s2013_s5 + $0x28] sm:$0xff] %v448_v51  ;;  %v809_v47 = vmax.f32 %v800_v30, 0.0  ;;  %v1431_v51 = vld [vmem:[%s1661_s14 + $0xe0] sm:$0xff] }
 0x260   : > { %v617_v24 = vpop.permute.xlu0 %616  ;;  %v426_v19 = vpop.permute.xlu2 %425 }
 0x261   : > { %v654_v20 = vmul.f32 %v1758_v45, %v617_v24  ;;  %v655_v59 = vmul.f32 %v1763_v48, %v617_v24  ;;  %v451_v49 = vmul.f32 %v426_v19, %v1684_v13  ;;  %v452_v16 = vmul.f32 %v426_v19, %v1687_v14  ;;  %v1432_v24 = vld [vmem:[%s1661_s14 + $0xe8] sm:$0xff] }
 0x262   : > { %v817_v8 = vmin.f32 %v809_v47, 6.0 }
 0x263   : > { %1247 = vst [vmem:[%s2013_s5 + $0x80] sm:$0xff] %v654_v20 }
 0x264   : > { %1248 = vst [vmem:[%s2013_s5 + $0x88] sm:$0xff] %v655_v59  ;;  %v825_v13 = vmul.f32 0.16666667, %v817_v8 }
 0x265   : > { %467 = vst [vmem:[%s2013_s5 + $0x40] sm:$0xff] %v451_v49 }
 0x266   : > { %468 = vst [vmem:[%s2013_s5 + $0x48] sm:$0xff] %v452_v16  ;;  %863 = vperm.xlu0 %1422, %v825_v13  }
 0x268   : > { %v839_v12 = vpop.permute.xlu2 %838 }
 0x269   : > { %v870_v45 = vmul.f32 %v1794_v63, %v839_v12  ;;  %v871_v48 = vmul.f32 %v1803_v3, %v839_v12 }
 0x26b   : > { %1293 = vst [vmem:[%s2013_s5 + $0x120] sm:$0xff] %v870_v45 }
 0x26c   : > { %1294 = vst [vmem:[%s2013_s5 + $0x128] sm:$0xff] %v871_v48 }
 0x26e   : > { %v829_v14 = vpop.permute.xlu1 %828 }
 0x26f   : > { %v866_v46 = vmul.f32 %v1806_v5, %v829_v14  ;;  %v867_v21 = vmul.f32 %v1809_v6, %v829_v14 }
 0x270   : > { %v637_v10 = vpop.permute.xlu2 %636 }
 0x271   : > { %1289 = vst [vmem:[%s2013_s5 + $0x100] sm:$0xff] %v866_v46  ;;  %v662_v63 = vmul.f32 %v1700_v22, %v637_v10  ;;  %v663_v3 = vmul.f32 %v1703_v23, %v637_v10 }
 0x272   : > { %1290 = vst [vmem:[%s2013_s5 + $0x108] sm:$0xff] %v867_v21 }
 0x273   : > { %1255 = vst [vmem:[%s2013_s5 + $0xc0] sm:$0xff] %v662_v63 }
 0x274   : > { %1256 = vst [vmem:[%s2013_s5 + $0xc8] sm:$0xff] %v663_v3 }
 0x276   : > { %v627_v7 = vpop.permute.xlu1 %626  ;;  %v834_v5 = vpop.permute.xlu0 %833 }
 0x277   : > { %v658_v6 = vmul.f32 %v1734_v36, %v627_v7  ;;  %v659_v25 = vmul.f32 %v1743_v39, %v627_v7  ;;  %v868_v42 = vmul.f32 %v1797_v0, %v834_v5  ;;  %v869_v22 = vmul.f32 %v1800_v1, %v834_v5  ;;  %v1425_v0 = vld [vmem:[%s1661_s14 + $0x50] sm:$0xff] }
 0x278   : > { %v436_v23 = vpop.permute.xlu2 %435 }
 0x279   : > { %1251 = vst [vmem:[%s2013_s5 + $0xa0] sm:$0xff] %v658_v6  ;;  %v455_v52 = vmul.f32 %v1423_v44, %v436_v23  ;;  %v456_v33 = vmul.f32 %v1424_v53, %v436_v23 }
 0x27a   : > { %1252 = vst [vmem:[%s2013_s5 + $0xa8] sm:$0xff] %v659_v25 }
 0x27b   : > { %1291 = vst [vmem:[%s2013_s5 + $0x110] sm:$0xff] %v868_v42 }
 0x27c   : > { %1292 = vst [vmem:[%s2013_s5 + $0x118] sm:$0xff] %v869_v22 }
 0x27d   : > { %471 = vst [vmem:[%s2013_s5 + $0x60] sm:$0xff] %v455_v52 }
 0x27e   : > { %472 = vst [vmem:[%s2013_s5 + $0x68] sm:$0xff] %v456_v33  ;;  %v431_v36 = vpop.permute.xlu1 %430  ;;  %v632_v39 = vpop.permute.xlu0 %631 }
 0x27f   : > { %v453_v1 = vmul.f32 %v1425_v0, %v431_v36  ;;  %v454_v61 = vmul.f32 %v1426_v43, %v431_v36  ;;  %v660_v62 = vmul.f32 %v1710_v27, %v632_v39  ;;  %v661_v55 = vmul.f32 %v1713_v28, %v632_v39 }
 0x280   : > { %v854_v37 = vpop.permute.xlu2 %853 }
 0x281   : > { %469 = vst [vmem:[%s2013_s5 + $0x50] sm:$0xff] %v453_v1  ;;  %v876_v38 = vmul.f32 %v1770_v54, %v854_v37  ;;  %v877_v18 = vmul.f32 %v1779_v57, %v854_v37  ;;  %v1427_v54 = vld [vmem:[%s1661_s14 + $0xf0] sm:$0xff]  ;;  %v1428_v57 = vld [vmem:[%s1661_s14 + $0xf8] sm:$0xff] }
 0x282   : > { %470 = vst [vmem:[%s2013_s5 + $0x58] sm:$0xff] %v454_v61 }
 0x283   : > { %1253 = vst [vmem:[%s2013_s5 + $0xb0] sm:$0xff] %v660_v62 }
 0x284   : > { %1254 = vst [vmem:[%s2013_s5 + $0xb8] sm:$0xff] %v661_v55 }
 0x285   : > { %1299 = vst [vmem:[%s2013_s5 + $0x150] sm:$0xff] %v876_v38 }
 0x286   : > { %1300 = vst [vmem:[%s2013_s5 + $0x158] sm:$0xff] %v877_v18  ;;  %v844_v27 = vpop.permute.xlu1 %843 }
 0x287   : > { %v872_v28 = vmul.f32 %v1782_v58, %v844_v27  ;;  %v873_v9 = vmul.f32 %v2223_v35, %v844_v27  ;;  %v1429_v58 = vld [vmem:[%s1661_s14 + $0xd0] sm:$0xff]  ;;  %v1433_v27 = vld [vmem:[%s1661_s14 + $0x160] sm:$0xff]  ;;  %v1434_v35 = vld [vmem:[%s1661_s14 + $0x168] sm:$0xff] }
 0x288   : > { %v652_v11 = vpop.permute.xlu2 %651 }
 0x289   : > { %1295 = vst [vmem:[%s2013_s5 + $0x130] sm:$0xff] %v872_v28  ;;  %v668_v60 = vmul.f32 %v1427_v54, %v652_v11  ;;  %v669_v15 = vmul.f32 %v1428_v57, %v652_v11 }
 0x28a   : > { %1296 = vst [vmem:[%s2013_s5 + $0x138] sm:$0xff] %v873_v9 }
 0x28b   : > { %1261 = vst [vmem:[%s2013_s5 + $0xf0] sm:$0xff] %v668_v60  ;;  %v1435_v60 = vld [vmem:[%s1661_s14 + $0x170] sm:$0xff] }
 0x28c   : > { %1262 = vst [vmem:[%s2013_s5 + $0xf8] sm:$0xff] %v669_v15  ;;  %v1436_v15 = vld [vmem:[%s1661_s14 + $0x178] sm:$0xff] }
 0x28e   : > { %v642_v26 = vpop.permute.xlu1 %641  ;;  %v849_v50 = vpop.permute.xlu0 %848 }
 0x28f   : > { %v664_v40 = vmul.f32 %v1429_v58, %v642_v26  ;;  %v665_v41 = vmul.f32 %v1430_v2, %v642_v26  ;;  %v874_v34 = vmul.f32 %v2224_v4, %v849_v50  ;;  %v875_v31 = vmul.f32 %v2225_v17, %v849_v50  ;;  %v2226_v58 = vld [vmem:[#allocation21_spill] sm:$0xff]  ;;  %v2227_v2 = vld [vmem:[#allocation22_spill] sm:$0xff] }
 0x291   : > { %1257 = vst [vmem:[%s2013_s5 + $0xd0] sm:$0xff] %v664_v40 }
 0x292   : > { %1258 = vst [vmem:[%s2013_s5 + $0xd8] sm:$0xff] %v665_v41 }
 0x293   : > { %1297 = vst [vmem:[%s2013_s5 + $0x140] sm:$0xff] %v874_v34  ;;  %v2228_v34 = vld [vmem:[#allocation13_spill] sm:$0xff] }
 0x294   : > { %1298 = vst [vmem:[%s2013_s5 + $0x148] sm:$0xff] %v875_v31  ;;  %v2229_v31 = vld [vmem:[#allocation14_spill] sm:$0xff] }
 0x296   : > { %v647_v32 = vpop.permute.xlu0 %646 }
 0x297   : > { %v666_v56 = vmul.f32 %v1431_v51, %v647_v32  ;;  %v667_v19 = vmul.f32 %v1432_v24, %v647_v32 }
 0x299   : > { %1259 = vst [vmem:[%s2013_s5 + $0xe0] sm:$0xff] %v666_v56  ;;  %v2230_v56 = vld [vmem:[#allocation15_spill] sm:$0xff] }
 0x29a   : > { %1260 = vst [vmem:[%s2013_s5 + $0xe8] sm:$0xff] %v667_v19  ;;  %v2231_v19 = vld [vmem:[#allocation16_spill] sm:$0xff] }
 0x2aa   : > { %v990_v20 = vpop.f32.mrf.mxu0  ;;  %v1002_v59 = vpop.f32.mrf.mxu1 }
 0x2ab   : > { %v991_v49 = vadd.f32 3.0, %v990_v20  ;;  %v1003_v16 = vadd.f32 3.0, %v1002_v59 }
 0x2ad   : > { %v1014_v29 = vmax.f32 %v991_v49, 0.0  ;;  %v1018_v30 = vmax.f32 %v1003_v16, 0.0  ;;  %v2232_v49 = vld [vmem:[#allocation19_spill] sm:$0xff] }
 0x2af   : > { %v1022_v12 = vmin.f32 %v1014_v29, 6.0  ;;  %v1026_v47 = vmin.f32 %v1018_v30, 6.0  ;;  %v2233_v29 = vld [vmem:[#allocation20_spill] sm:$0xff] }
 0x2b1   : > { %v1030_v45 = vmul.f32 0.16666667, %v1022_v12  ;;  %v1034_v48 = vmul.f32 0.16666667, %v1026_v47  ;;  %v2234_v47 = vld [vmem:[#allocation11_spill] sm:$0xff] }
 0x2b2   : > { %v993_v8 = vpop.f32.mrf.mxu0  ;;  %v1005_v13 = vpop.f32.mrf.mxu1 }
 0x2b3   : > { %v994_v14 = vadd.f32 3.0, %v993_v8  ;;  %1060 = vperm.xlu1 %1421, %v1034_v48   ;;  %1040 = vperm.xlu2 %1420, %v1030_v45   ;;  %v1006_v5 = vadd.f32 3.0, %v1005_v13  ;;  %v2235_v48 = vld [vmem:[#allocation12_spill] sm:$0xff] }
 0x2b5   : > { %v1015_v46 = vmax.f32 %v994_v14, 0.0  ;;  %v1019_v42 = vmax.f32 %v1006_v5, 0.0  ;;  %v2236_v14 = vld [vmem:[#allocation17_spill] sm:$0xff] }
 0x2b7   : > { %v1023_v21 = vmin.f32 %v1015_v46, 6.0  ;;  %v1027_v33 = vmin.f32 %v1019_v42, 6.0  ;;  %v1439_v42 = vld [vmem:[%s1661_s14 + $0x1d0] sm:$0xff] }
 0x2b9   : > { %v1031_v10 = vmul.f32 0.16666667, %v1023_v21  ;;  %v1035_v61 = vmul.f32 0.16666667, %v1027_v33  ;;  %v2237_v21 = vld [vmem:[#allocation18_spill] sm:$0xff] }
 0x2ba   : > { %v996_v63 = vpop.f32.mrf.mxu0  ;;  %v1008_v3 = vpop.f32.mrf.mxu1 }
 0x2bb   : > { %v997_v7 = vadd.f32 3.0, %v996_v63  ;;  %1045 = vperm.xlu1 %1421, %v1031_v10   ;;  %v1009_v0 = vadd.f32 3.0, %v1008_v3 }
 0x2bd   : > { %v1016_v6 = vmax.f32 %v997_v7, 0.0  ;;  %v1020_v37 = vmax.f32 %v1009_v0, 0.0  ;;  %v1437_v7 = vld [vmem:[%s1661_s14 + $0x1f0] sm:$0xff] }
 0x2bf   : > { %v1024_v25 = vmin.f32 %v1016_v6, 6.0  ;;  %v1028_v38 = vmin.f32 %v1020_v37, 6.0  ;;  %v1438_v6 = vld [vmem:[%s1661_s14 + $0x1f8] sm:$0xff] }
 0x2c1   : > { %v1032_v22 = vmul.f32 0.16666667, %v1024_v25  ;;  %v1036_v11 = vmul.f32 0.16666667, %v1028_v38 }
 0x2c2   : > { %v999_v23 = vpop.f32.mrf.mxu0  ;;  %v1011_v44 = vpop.f32.mrf.mxu1 }
 0x2c3   : > { %v1000_v52 = vadd.f32 3.0, %v999_v23  ;;  %v1012_v53 = vadd.f32 3.0, %v1011_v44  ;;  %1050 = vperm.xlu0 %1422, %v1032_v22   ;;  %v1440_v23 = vld [vmem:[%s1661_s14 + $0x1d8] sm:$0xff] }
 0x2c5   : > { %v1017_v36 = vmax.f32 %v1000_v52, 0.0  ;;  %v1021_v39 = vmax.f32 %v1012_v53, 0.0 }
 0x2c7   : > { %v1025_v1 = vmin.f32 %v1017_v36, 6.0  ;;  %v1029_v43 = vmin.f32 %v1021_v39, 6.0 }
 0x2c9   : > { %v1033_v62 = vmul.f32 0.16666667, %v1025_v1  ;;  %v1037_v55 = vmul.f32 0.16666667, %v1029_v43 }
 0x2cb   : > { %1075 = vperm.xlu1 %1421, %v1037_v55   ;;  %1065 = vperm.xlu0 %1422, %v1035_v61   ;;  %v859_v18 = vpop.permute.xlu1 %858 }
 0x2cc   : > { %1055 = vperm.xlu2 %1420, %v1033_v62   ;;  %v878_v28 = vmul.f32 %v1433_v27, %v859_v18  ;;  %v879_v9 = vmul.f32 %v1434_v35, %v859_v18 }
 0x2ce   : > { %1301 = vst [vmem:[%s2013_s5 + $0x160] sm:$0xff] %v878_v28 }
 0x2cf   : > { %1302 = vst [vmem:[%s2013_s5 + $0x168] sm:$0xff] %v879_v9 }
 0x2d4   : > { %1070 = vperm.xlu2 %1420, %v1036_v11  }
 0x2d8   : > { %v864_v54 = vpop.permute.xlu0 %863 }
 0x2d9   : > { %v880_v57 = vmul.f32 %v1435_v60, %v864_v54  ;;  %v881_v26 = vmul.f32 %v1436_v15, %v864_v54 }
 0x2db   : > { %1303 = vst [vmem:[%s2013_s5 + $0x170] sm:$0xff] %v880_v57 }
 0x2dc   : > { %1304 = vst [vmem:[%s2013_s5 + $0x178] sm:$0xff] %v881_v26 }
 0x30d   : > { %v1041_v50 = vpop.permute.xlu2 %1040 }
 0x30e   : > { %v1078_v40 = vmul.f32 %v2226_v58, %v1041_v50  ;;  %v1079_v41 = vmul.f32 %v2227_v2, %v1041_v50 }
 0x310   : > { %1331 = vst [vmem:[%s2013_s5 + $0x180] sm:$0xff] %v1078_v40 }
 0x311   : > { %1332 = vst [vmem:[%s2013_s5 + $0x188] sm:$0xff] %v1079_v41 }
 0x325   : > { %v1061_v4 = vpop.permute.xlu1 %1060 }
 0x326   : > { %v1086_v17 = vmul.f32 %v2228_v34, %v1061_v4  ;;  %v1087_v32 = vmul.f32 %v2229_v31, %v1061_v4  ;;  %v1056_v51 = vpop.permute.xlu2 %1055 }
 0x327   : > { %v1084_v24 = vmul.f32 %v2230_v56, %v1056_v51  ;;  %v1085_v20 = vmul.f32 %v2231_v19, %v1056_v51 }
 0x328   : > { %1339 = vst [vmem:[%s2013_s5 + $0x1c0] sm:$0xff] %v1086_v17 }
 0x329   : > { %1340 = vst [vmem:[%s2013_s5 + $0x1c8] sm:$0xff] %v1087_v32 }
 0x32a   : > { %1337 = vst [vmem:[%s2013_s5 + $0x1b0] sm:$0xff] %v1084_v24 }
 0x32b   : > { %1338 = vst [vmem:[%s2013_s5 + $0x1b8] sm:$0xff] %v1085_v20 }
 0x32d   : > { %v1046_v59 = vpop.permute.xlu1 %1045 }
 0x32e   : > { %v1080_v16 = vmul.f32 %v2232_v49, %v1046_v59  ;;  %v1081_v30 = vmul.f32 %v2233_v29, %v1046_v59  ;;  %v1071_v12 = vpop.permute.xlu2 %1070 }
 0x32f   : > { %v1090_v45 = vmul.f32 %v2234_v47, %v1071_v12  ;;  %v1091_v8 = vmul.f32 %v2235_v48, %v1071_v12 }
 0x330   : > { %1333 = vst [vmem:[%s2013_s5 + $0x190] sm:$0xff] %v1080_v16 }
 0x331   : > { %1334 = vst [vmem:[%s2013_s5 + $0x198] sm:$0xff] %v1081_v30 }
 0x332   : > { %1343 = vst [vmem:[%s2013_s5 + $0x1e0] sm:$0xff] %v1090_v45 }
 0x333   : > { %1344 = vst [vmem:[%s2013_s5 + $0x1e8] sm:$0xff] %v1091_v8 }
 0x335   : > { %v1051_v13 = vpop.permute.xlu0 %1050 }
 0x336   : > { %v1082_v46 = vmul.f32 %v2236_v14, %v1051_v13  ;;  %v1083_v10 = vmul.f32 %v2237_v21, %v1051_v13 }
 0x338   : > { %1335 = vst [vmem:[%s2013_s5 + $0x1a0] sm:$0xff] %v1082_v46 }
 0x339   : > { %1336 = vst [vmem:[%s2013_s5 + $0x1a8] sm:$0xff] %v1083_v10 }
 0x33d   : > { %v1076_v63 = vpop.permute.xlu1 %1075  ;;  %v1066_v3 = vpop.permute.xlu0 %1065 }
 0x33e   : > { %v1092_v5 = vmul.f32 %v1437_v7, %v1076_v63  ;;  %v1093_v25 = vmul.f32 %v1438_v6, %v1076_v63  ;;  %v1088_v22 = vmul.f32 %v1439_v42, %v1066_v3  ;;  %v1089_v44 = vmul.f32 %v1440_v23, %v1066_v3 }
 0x340   : > { %1345 = vst [vmem:[%s2013_s5 + $0x1f0] sm:$0xff] %v1092_v5 }
 0x341   : > { %1346 = vst [vmem:[%s2013_s5 + $0x1f8] sm:$0xff] %v1093_v25 }
 0x342   : > { %1341 = vst [vmem:[%s2013_s5 + $0x1d0] sm:$0xff] %v1088_v22 }
 0x343   : > { %1342 = vst [vmem:[%s2013_s5 + $0x1d8] sm:$0xff] %v1089_v44 }
 0x344   : > { %1498 = shalt.err (!%p1495_p4)
}
 0x345   : > { %s1542_s7 = smov 256   ;;  %s1543_s25 = smov 16  }
 0x346   : > { %1371 = dma.vmem_to_hbm [thread:$0]  (%p1619_p11), %s1126_s26, 8192, %s1128_s9, %s1112_s19, %s1542_s7, %s1542_s7, %s1543_s25  }
 0x347 PF: > { %s1142_s30 = sand.u32 1, %s1525_s15   ;;  %p2238_p7 = scmp.ge.s32.totalorder %s1537_s18, 2 }
 0x348   : > { %s1143_s5 = scalar_lea.sflag [#allocation4], %s1142_s30 }
 0x349   : > { %p1378_p5 = pnand %p2238_p7, %p1623_p12 }
 0x34b   : > { %p1379_p8 = pneg %p1378_p5 }
 0x34d   : > { %1520 = dma.done.wait (%p1379_p8), %s1143_s5, 8192  }
 0x34e   : > { %1522 = vsyncadd (%p1379_p8), %s1143_s5, 4294959104  ;;  %p17_p10 = scmp.ge.s32.totalorder %s1594_s21, 4   ;;  %s2239_s15 = smov %s1529_s16 }
 0x34f   : > { %s2240_s16 = smov %s1533_s17  ;;  %s2241_s17 = smov %s1606_s24 }
 0x350   : > { %s2242_s18 = smov %s1594_s21  ;;  %19 = sbr.rel (!%p17_p10) target bundleno = 5 (0x5), region = 87 }
 0x355   :  { %1149 = vsyncpa [#allocation3], 1 }
 0x356   :  { %1151 = vsyncpa [#allocation3 + $0x1], 1 }
 0x357   :  { %1152 = vsyncpa [#allocation4], 1 }
 0x358   :  { %1154 = vsyncpa [#allocation4 + $0x1], 1 }

</bundles_post_ra>
